<compile_context>
chip_gen: v5e
topology: v5e:2x2
jax: 0.10.0
libtpu: 0.0.40
codegen_flags: <defaults>
</compile_context>

<pallas_src>
import numpy as np
import jax
import jax.numpy as jnp
from jax.experimental import pallas as pl
from jax.experimental.pallas import tpu as pltpu

# ----------------------- hyperparameters (match MitarNet) -------------------------
N_EMBEDDINGS = 5                                   # one-hot alphabet size
INPUT_SIZE   = 26                                  # sequence length
BATCH        = 2
EMB_DIM      = 5                                   # MitarNet.embedding_dim
KERNEL_SIZE  = 12
N_FILTERS    = 320
LSTM_H       = 32
CLS_HID      = 16
D_IN         = INPUT_SIZE * N_EMBEDDINGS           # 130, embedding Linear size
L_CONV       = INPUT_SIZE - (KERNEL_SIZE - 1)      # 15, Conv1d output length
L_POOL       = L_CONV // 2                         # 7, MaxPool1d(2) output length
CLS_IN       = L_POOL * 2 * LSTM_H                 # 448, classifier input
WIN          = EMB_DIM * KERNEL_SIZE               # 60, im2col window width

# conv steps ordered so the MaxPool1d(2) partners are exactly the two row halves
_CONV_STEP_ORDER = tuple(range(0, 2 * L_POOL, 2)) + tuple(range(1, 2 * L_POOL, 2))


# ------------------------------- fused kernel --------------------------------------
def _sigmoid(v):
    # 0.5*(tanh(v/2)+1): exact sigmoid, tanh runs on the EUP slot, no true divide
    return 0.5 * (jnp.tanh(0.5 * v) + 1.0)


def _mitar_fused_kernel(x_ref, w_emb_ref, b_emb_ref,
                        w_conv_ref, b_conv_ref,
                        wih_ref, bih_ref, whh_ref,
                        w1_ref, b1_ref, w2_ref, b2_ref,
                        out_ref):
    Bp = x_ref.shape[0]                              # padded batch (multiple of 8)

    # ---- embedding Linear (output columns permuted offline to time-major) ---------
    emb = (jnp.dot(x_ref[...], w_emb_ref[...], preferred_element_type=jnp.float32)
           + b_emb_ref[...])                                            # (Bp, 130) f32

    # ---- Conv1d(5,320,12) as ONE im2col matmul -------------------------------------
    # Time-major layout => conv-step-t window is the contiguous slice emb[:, 5t:5t+60].
    # Rows: even conv steps first, then odd conv steps (max-pool pairs = row halves).
    win = jnp.concatenate([emb[:, EMB_DIM * t: EMB_DIM * t + WIN]
                           for t in _CONV_STEP_ORDER], axis=0)          # (14*Bp, 60)
    conv = jnp.dot(win.astype(jnp.bfloat16), w_conv_ref[...],
                   preferred_element_type=jnp.float32)                  # (14*Bp, 320)

    # ---- MaxPool1d(2); bias commutes with max (same constant on both operands) -----
    half = L_POOL * Bp
    pooled = jnp.maximum(conv[:half, :], conv[half:, :]) + b_conv_ref[...]   # (7*Bp,320)

    # ---- hoisted LSTM input projection, both directions in one matmul --------------
    gates_in = (jnp.dot(pooled.astype(jnp.bfloat16), wih_ref[...],
                        preferred_element_type=jnp.float32)
                + bih_ref[...])                                          # (7*Bp, 256)

    whh = whh_ref[...]                                                   # (64, 256) f32

    def cell(g, c):
        i  = _sigmoid(g[:, 0 * LSTM_H:1 * LSTM_H])
        f  = _sigmoid(g[:, 1 * LSTM_H:2 * LSTM_H])
        gg = jnp.tanh(g[:, 2 * LSTM_H:3 * LSTM_H])
        o  = _sigmoid(g[:, 3 * LSTM_H:4 * LSTM_H])
        c  = f * c + i * gg
        return o * jnp.tanh(c), c

    h_cat = jnp.zeros((Bp, 2 * LSTM_H), jnp.float32)     # [h_fwd | h_bwd]
    c_f   = jnp.zeros((Bp, LSTM_H), jnp.float32)
    c_b   = jnp.zeros((Bp, LSTM_H), jnp.float32)
    z     = jnp.zeros((Bp, CLS_HID), jnp.float32)

    # fused recurrence: loop step k runs forward time k and backward time L_POOL-1-k
    for k in range(L_POOL):
        tb = L_POOL - 1 - k
        gx = jnp.concatenate(
            [gates_in[k * Bp:(k + 1) * Bp, 0:4 * LSTM_H],
             gates_in[tb * Bp:(tb + 1) * Bp, 4 * LSTM_H:8 * LSTM_H]], axis=1)  # (Bp,256)
        g = gx + jnp.dot(h_cat, whh, preferred_element_type=jnp.float32)       # 1 push
        h_f, c_f = cell(g[:, 0:4 * LSTM_H], c_f)
        h_b, c_b = cell(g[:, 4 * LSTM_H:8 * LSTM_H], c_b)
        h_cat = jnp.concatenate([h_f, h_b], axis=1)                            # (Bp, 64)
        # classifier pre-activation accumulated on the fly (w1 regrouped offline)
        z = z + jnp.dot(h_cat, w1_ref[k * 2 * LSTM_H:(k + 1) * 2 * LSTM_H, :],
                        preferred_element_type=jnp.float32)

    # ---- classifier: ReLU(feat @ w1 + b1) @ w2 + b2 (dropout = identity) -----------
    z = jnp.maximum(z + b1_ref[...], 0.0)                                # (Bp, 16)
    out_ref[...] = (jnp.dot(z, w2_ref[...], preferred_element_type=jnp.float32)
                    + b2_ref[...])                                       # (Bp, 1)


# ------------------------------- wrapper --------------------------------------------
def mitar_forward(x, params):
    B = x.shape[0]
    Bp = ((B + 7) // 8) * 8                          # full sublane tiles everywhere
    xf = x.reshape(B, -1).astype(jnp.float32)        # nn.Flatten()
    xf = jnp.pad(xf, ((0, Bp - B), (0, 0))).astype(jnp.bfloat16)
    out = pl.pallas_call(
        _mitar_fused_kernel,
        out_shape=jax.ShapeDtypeStruct((Bp, 1), jnp.float32),
        compiler_params=pltpu.CompilerParams(vmem_limit_bytes=32 * 1024 * 1024),
    )(xf,
      params["k_w_emb"], params["k_b_emb"],
      params["k_w_conv"], params["b_conv"],
      params["k_wih"], params["k_bias"], params["k_whh"],
      params["k_w1"], params["b1"], params["w2"], params["b2"])
    return out[:B]


# ---------------------------- parameters --------------------------------------------
def init_params(key):
    ks = jax.random.split(key, 16)
    s = 0.05

    def nrm(k, shape):
        return s * jax.random.normal(k, shape, jnp.float32)

    # torch-layout parameters
    w_emb_t = nrm(ks[0], (D_IN, D_IN))                        # Linear(D_IN, D_IN): (out, in)
    b_emb_t = nrm(ks[1], (D_IN,))
    w_conv_t = nrm(ks[2], (N_FILTERS, EMB_DIM, KERNEL_SIZE))  # Conv1d weight (O, C, K)
    b_conv_t = nrm(ks[3], (N_FILTERS,))
    wih_f_t = nrm(ks[4], (4 * LSTM_H, N_FILTERS)); whh_f_t = nrm(ks[5], (4 * LSTM_H, LSTM_H))
    bih_f_t = nrm(ks[6], (4 * LSTM_H,));           bhh_f_t = nrm(ks[7], (4 * LSTM_H,))
    wih_b_t = nrm(ks[8], (4 * LSTM_H, N_FILTERS)); whh_b_t = nrm(ks[9], (4 * LSTM_H, LSTM_H))
    bih_b_t = nrm(ks[10], (4 * LSTM_H,));          bhh_b_t = nrm(ks[11], (4 * LSTM_H,))
    w1_t = nrm(ks[12], (CLS_HID, CLS_IN)); b1_t = nrm(ks[13], (CLS_HID,))
    w2_t = nrm(ks[14], (1, CLS_HID));      b2_t = nrm(ks[15], (1,))

    params = {
        # ---- plain layouts (used by the pure-JAX reference) ----
        "w_emb": w_emb_t.T,                                   # x @ W^T, channel-major out
        "b_emb": b_emb_t.reshape(1, D_IN),
        "w_conv": jnp.transpose(w_conv_t, (1, 2, 0)).reshape(WIN, N_FILTERS),  # row c*K+k
        "b_conv": b_conv_t.reshape(1, N_FILTERS),
        "wih_f": wih_f_t.T, "whh_f": whh_f_t.T,
        "bias_f": (bih_f_t + bhh_f_t).reshape(1, 4 * LSTM_H),
        "wih_b": wih_b_t.T, "whh_b": whh_b_t.T,
        "bias_b": (bih_b_t + bhh_b_t).reshape(1, 4 * LSTM_H),
        "w1": w1_t.T, "b1": b1_t.reshape(1, CLS_HID),
        "w2": w2_t.T, "b2": b2_t.reshape(1, 1),
    }

    # ---- kernel-layout derived weights (one-time, input-independent preprocessing) ----
    # (a) embedding weight with OUTPUT columns permuted to time-major (t*5+c <- c*26+t),
    #     so conv windows become contiguous lane slices in the kernel.  Stored bf16.
    perm = np.array([c * INPUT_SIZE + t for t in range(INPUT_SIZE) for c in range(EMB_DIM)])
    params["k_w_emb"] = jnp.asarray(np.asarray(w_emb_t.T)[:, perm], jnp.bfloat16)
    params["k_b_emb"] = jnp.asarray(np.asarray(b_emb_t)[perm].reshape(1, D_IN), jnp.float32)
    # (b) compact im2col conv weight, row order k*C+c (time-major windows).  bf16.
    params["k_w_conv"] = jnp.asarray(
        np.transpose(np.asarray(w_conv_t), (2, 1, 0)).reshape(WIN, N_FILTERS), jnp.bfloat16)
    # (c) concatenated LSTM input projection / bias (lanes 0:128 fwd, 128:256 bwd).  bf16.
    params["k_wih"]  = jnp.concatenate([params["wih_f"], params["wih_b"]], axis=1
                                       ).astype(jnp.bfloat16)
    params["k_bias"] = jnp.concatenate([params["bias_f"], params["bias_b"]], axis=1)
    # (d) block-diagonal recurrent weight: [h_f | h_b] @ k_whh -> [fwd gates | bwd gates]
    whh_k = np.zeros((2 * LSTM_H, 8 * LSTM_H), np.float32)
    whh_k[:LSTM_H, :4 * LSTM_H] = np.asarray(whh_f_t).T
    whh_k[LSTM_H:, 4 * LSTM_H:] = np.asarray(whh_b_t).T
    params["k_whh"] = jnp.asarray(whh_k)
    # (e) classifier w1 rows regrouped per fused step k: [fwd rows of time k ; bwd rows of
    #     time L_POOL-1-k], so z accumulates with one (B,64)@(64,16) dot per fused step.
    w1_k_np = np.asarray(w1_t.T)                              # (448, 16), row = t*64 + d
    w1_fused = np.zeros_like(w1_k_np)
    for k in range(L_POOL):
        tb = L_POOL - 1 - k
        w1_fused[k * 64:k * 64 + 32]       = w1_k_np[k * 64:k * 64 + 32]
        w1_fused[k * 64 + 32:(k + 1) * 64] = w1_k_np[tb * 64 + 32:tb * 64 + 64]
    params["k_w1"] = jnp.asarray(w1_fused)
    return params


# ----------------------------- pure-JAX reference ------------------------------------
def reference_forward(x, params):
    B = x.shape[0]
    xf = x.reshape(B, -1)
    emb = xf @ params["w_emb"] + params["b_emb"]
    emb3 = emb.reshape(B, EMB_DIM, INPUT_SIZE)
    wc = params["w_conv"].reshape(EMB_DIM, KERNEL_SIZE, N_FILTERS)
    windows = jnp.stack([emb3[:, :, t:t + KERNEL_SIZE] for t in range(L_CONV)], axis=1)
    conv = jnp.einsum("blck,cko->blo", windows, wc) + params["b_conv"][0]
    pooled = jnp.max(conv[:, : 2 * L_POOL, :].reshape(B, L_POOL, 2, N_FILTERS), axis=2)

    def sig(v):
        return 1.0 / (1.0 + jnp.exp(-v))

    def run_dir(wih, whh, bias, reverse):
        h = jnp.zeros((B, LSTM_H)); c = jnp.zeros((B, LSTM_H))
        hs = [None] * L_POOL
        order = reversed(range(L_POOL)) if reverse else range(L_POOL)
        for t in order:
            gates = pooled[:, t, :] @ wih + h @ whh + bias
            i = sig(gates[:, :LSTM_H]); f = sig(gates[:, LSTM_H:2 * LSTM_H])
            g = jnp.tanh(gates[:, 2 * LSTM_H:3 * LSTM_H]); o = sig(gates[:, 3 * LSTM_H:])
            c = f * c + i * g
            h = o * jnp.tanh(c)
            hs[t] = h
        return hs

    hs_f = run_dir(params["wih_f"], params["whh_f"], params["bias_f"], False)
    hs_b = run_dir(params["wih_b"], params["whh_b"], params["bias_b"], True)
    feat = jnp.concatenate(
        [jnp.concatenate([hs_f[t], hs_b[t]], axis=1) for t in range(L_POOL)], axis=1)
    z = jnp.maximum(feat @ params["w1"] + params["b1"], 0.0)
    return z @ params["w2"] + params["b2"]


# --------------------------------- main -----------------------------------------------
if __name__ == "__main__":
    key = jax.random.PRNGKey(0)
    kx, kp = jax.random.split(key)
    x = jax.random.normal(kx, (BATCH, INPUT_SIZE, N_EMBEDDINGS), jnp.float32)
    params = init_params(kp)

    fwd = jax.jit(mitar_forward)
    out = jax.block_until_ready(fwd(x, params))

    ref = reference_forward(x, params)
    np.testing.assert_allclose(np.asarray(out), np.asarray(ref), rtol=2e-2, atol=2e-2)
    print("KERNEL_OK")
</pallas_src>

<mosaic_0001>
module attributes {stable_mosaic.version = 11 : i64} {
  func.func @_mitar_fused_kernel(%arg0: memref<8x130xbf16, #tpu.memory_space<vmem>>, %arg1: memref<130x130xbf16, #tpu.memory_space<vmem>>, %arg2: memref<1x130xf32, #tpu.memory_space<vmem>>, %arg3: memref<60x320xbf16, #tpu.memory_space<vmem>>, %arg4: memref<1x320xf32, #tpu.memory_space<vmem>>, %arg5: memref<320x256xbf16, #tpu.memory_space<vmem>>, %arg6: memref<1x256xf32, #tpu.memory_space<vmem>>, %arg7: memref<64x256xf32, #tpu.memory_space<vmem>>, %arg8: memref<448x16xf32, #tpu.memory_space<vmem>>, %arg9: memref<1x16xf32, #tpu.memory_space<vmem>>, %arg10: memref<16x1xf32, #tpu.memory_space<vmem>>, %arg11: memref<1x1xf32, #tpu.memory_space<vmem>>, %arg12: memref<8x1xf32, #tpu.memory_space<vmem>>) attributes {dimension_semantics = [], scalar_prefetch = 0 : i64, scratch_operands = 0 : i64, tpu.core_type = #tpu.core_type<tc>} {
    %c0 = arith.constant 0 : index
    %c0_0 = arith.constant 0 : index
    %0 = vector.load %arg0[%c0, %c0_0] : memref<8x130xbf16, #tpu.memory_space<vmem>>, vector<8x130xbf16>
    %c0_1 = arith.constant 0 : index
    %c0_2 = arith.constant 0 : index
    %1 = vector.load %arg1[%c0_1, %c0_2] : memref<130x130xbf16, #tpu.memory_space<vmem>>, vector<130x130xbf16>
    %cst = arith.constant dense<0.000000e+00> : vector<8x130xf32>
    %2 = tpu.matmul %0, %1, %cst {dimension_numbers = #tpu.dot_dimension_numbers<[1], [0], [0], [1], [0, 0, 1, 1], [], []>} : vector<8x130xbf16>, vector<130x130xbf16>, vector<8x130xf32> -> vector<8x130xf32>
    %c0_3 = arith.constant 0 : index
    %c0_4 = arith.constant 0 : index
    %3 = vector.load %arg2[%c0_3, %c0_4] : memref<1x130xf32, #tpu.memory_space<vmem>>, vector<1x130xf32>
    %4 = vector.broadcast %3 : vector<1x130xf32> to vector<8x130xf32>
    %5 = arith.addf %2, %4 : vector<8x130xf32>
    %6 = vector.extract_strided_slice %5 {offsets = [0, 0], sizes = [8, 60], strides = [1, 1]} : vector<8x130xf32> to vector<8x60xf32>
    %7 = vector.extract_strided_slice %5 {offsets = [0, 10], sizes = [8, 60], strides = [1, 1]} : vector<8x130xf32> to vector<8x60xf32>
    %8 = vector.extract_strided_slice %5 {offsets = [0, 20], sizes = [8, 60], strides = [1, 1]} : vector<8x130xf32> to vector<8x60xf32>
    %9 = vector.extract_strided_slice %5 {offsets = [0, 30], sizes = [8, 60], strides = [1, 1]} : vector<8x130xf32> to vector<8x60xf32>
    %10 = vector.extract_strided_slice %5 {offsets = [0, 40], sizes = [8, 60], strides = [1, 1]} : vector<8x130xf32> to vector<8x60xf32>
    %11 = vector.extract_strided_slice %5 {offsets = [0, 50], sizes = [8, 60], strides = [1, 1]} : vector<8x130xf32> to vector<8x60xf32>
    %12 = vector.extract_strided_slice %5 {offsets = [0, 60], sizes = [8, 60], strides = [1, 1]} : vector<8x130xf32> to vector<8x60xf32>
    %13 = vector.extract_strided_slice %5 {offsets = [0, 5], sizes = [8, 60], strides = [1, 1]} : vector<8x130xf32> to vector<8x60xf32>
    %14 = vector.extract_strided_slice %5 {offsets = [0, 15], sizes = [8, 60], strides = [1, 1]} : vector<8x130xf32> to vector<8x60xf32>
    %15 = vector.extract_strided_slice %5 {offsets = [0, 25], sizes = [8, 60], strides = [1, 1]} : vector<8x130xf32> to vector<8x60xf32>
    %16 = vector.extract_strided_slice %5 {offsets = [0, 35], sizes = [8, 60], strides = [1, 1]} : vector<8x130xf32> to vector<8x60xf32>
    %17 = vector.extract_strided_slice %5 {offsets = [0, 45], sizes = [8, 60], strides = [1, 1]} : vector<8x130xf32> to vector<8x60xf32>
    %18 = vector.extract_strided_slice %5 {offsets = [0, 55], sizes = [8, 60], strides = [1, 1]} : vector<8x130xf32> to vector<8x60xf32>
    %19 = vector.extract_strided_slice %5 {offsets = [0, 65], sizes = [8, 60], strides = [1, 1]} : vector<8x130xf32> to vector<8x60xf32>
    %20 = tpu.concatenate %6, %7, %8, %9, %10, %11, %12, %13, %14, %15, %16, %17, %18, %19 in 0 : vector<8x60xf32>, vector<8x60xf32>, vector<8x60xf32>, vector<8x60xf32>, vector<8x60xf32>, vector<8x60xf32>, vector<8x60xf32>, vector<8x60xf32>, vector<8x60xf32>, vector<8x60xf32>, vector<8x60xf32>, vector<8x60xf32>, vector<8x60xf32>, vector<8x60xf32> -> vector<112x60xf32>
    %21 = arith.truncf %20 : vector<112x60xf32> to vector<112x60xbf16>
    %c0_5 = arith.constant 0 : index
    %c0_6 = arith.constant 0 : index
    %22 = vector.load %arg3[%c0_5, %c0_6] : memref<60x320xbf16, #tpu.memory_space<vmem>>, vector<60x320xbf16>
    %cst_7 = arith.constant dense<0.000000e+00> : vector<112x320xf32>
    %23 = tpu.matmul %21, %22, %cst_7 {dimension_numbers = #tpu.dot_dimension_numbers<[1], [0], [0], [1], [0, 0, 1, 1], [], []>} : vector<112x60xbf16>, vector<60x320xbf16>, vector<112x320xf32> -> vector<112x320xf32>
    %24 = vector.extract_strided_slice %23 {offsets = [0, 0], sizes = [56, 320], strides = [1, 1]} : vector<112x320xf32> to vector<56x320xf32>
    %25 = vector.extract_strided_slice %23 {offsets = [56, 0], sizes = [56, 320], strides = [1, 1]} : vector<112x320xf32> to vector<56x320xf32>
    %26 = arith.maximumf %24, %25 : vector<56x320xf32>
    %c0_8 = arith.constant 0 : index
    %c0_9 = arith.constant 0 : index
    %27 = vector.load %arg4[%c0_8, %c0_9] : memref<1x320xf32, #tpu.memory_space<vmem>>, vector<1x320xf32>
    %28 = vector.broadcast %27 : vector<1x320xf32> to vector<56x320xf32>
    %29 = arith.addf %26, %28 : vector<56x320xf32>
    %30 = arith.truncf %29 : vector<56x320xf32> to vector<56x320xbf16>
    %c0_10 = arith.constant 0 : index
    %c0_11 = arith.constant 0 : index
    %31 = vector.load %arg5[%c0_10, %c0_11] : memref<320x256xbf16, #tpu.memory_space<vmem>>, vector<320x256xbf16>
    %cst_12 = arith.constant dense<0.000000e+00> : vector<56x256xf32>
    %32 = tpu.matmul %30, %31, %cst_12 {dimension_numbers = #tpu.dot_dimension_numbers<[1], [0], [0], [1], [0, 0, 1, 1], [], []>} : vector<56x320xbf16>, vector<320x256xbf16>, vector<56x256xf32> -> vector<56x256xf32>
    %c0_13 = arith.constant 0 : index
    %c0_14 = arith.constant 0 : index
    %33 = vector.load %arg6[%c0_13, %c0_14] : memref<1x256xf32, #tpu.memory_space<vmem>>, vector<1x256xf32>
    %34 = vector.broadcast %33 : vector<1x256xf32> to vector<56x256xf32>
    %35 = arith.addf %32, %34 : vector<56x256xf32>
    %c0_15 = arith.constant 0 : index
    %c0_16 = arith.constant 0 : index
    %36 = vector.load %arg7[%c0_15, %c0_16] : memref<64x256xf32, #tpu.memory_space<vmem>>, vector<64x256xf32>
    %cst_17 = arith.constant 0.000000e+00 : f32
    %37 = vector.broadcast %cst_17 : f32 to vector<8x64xf32>
    %cst_18 = arith.constant 0.000000e+00 : f32
    %38 = vector.broadcast %cst_18 : f32 to vector<8x32xf32>
    %cst_19 = arith.constant 0.000000e+00 : f32
    %39 = vector.broadcast %cst_19 : f32 to vector<8x32xf32>
    %cst_20 = arith.constant 0.000000e+00 : f32
    %40 = vector.broadcast %cst_20 : f32 to vector<8x16xf32>
    %41 = vector.extract_strided_slice %35 {offsets = [0, 0], sizes = [8, 128], strides = [1, 1]} : vector<56x256xf32> to vector<8x128xf32>
    %42 = vector.extract_strided_slice %35 {offsets = [48, 128], sizes = [8, 128], strides = [1, 1]} : vector<56x256xf32> to vector<8x128xf32>
    %43 = tpu.concatenate %41, %42 in 1 : vector<8x128xf32>, vector<8x128xf32> -> vector<8x256xf32>
    %cst_21 = arith.constant dense<0.000000e+00> : vector<8x256xf32>
    %44 = tpu.matmul %37, %36, %cst_21 {dimension_numbers = #tpu.dot_dimension_numbers<[1], [0], [0], [1], [0, 0, 1, 1], [], []>} : vector<8x64xf32>, vector<64x256xf32>, vector<8x256xf32> -> vector<8x256xf32>
    %45 = arith.addf %43, %44 : vector<8x256xf32>
    %46 = vector.extract_strided_slice %45 {offsets = [0, 0], sizes = [8, 128], strides = [1, 1]} : vector<8x256xf32> to vector<8x128xf32>
    %47 = vector.extract_strided_slice %46 {offsets = [0, 0], sizes = [8, 32], strides = [1, 1]} : vector<8x128xf32> to vector<8x32xf32>
    %cst_22 = arith.constant 5.000000e-01 : f32
    %48 = vector.broadcast %cst_22 : f32 to vector<8x32xf32>
    %49 = arith.mulf %48, %47 : vector<8x32xf32>
    %50 = math.tanh %49 : vector<8x32xf32>
    %cst_23 = arith.constant 1.000000e+00 : f32
    %51 = vector.broadcast %cst_23 : f32 to vector<8x32xf32>
    %52 = arith.addf %50, %51 : vector<8x32xf32>
    %cst_24 = arith.constant 5.000000e-01 : f32
    %53 = vector.broadcast %cst_24 : f32 to vector<8x32xf32>
    %54 = arith.mulf %53, %52 : vector<8x32xf32>
    %55 = vector.extract_strided_slice %46 {offsets = [0, 32], sizes = [8, 32], strides = [1, 1]} : vector<8x128xf32> to vector<8x32xf32>
    %cst_25 = arith.constant 5.000000e-01 : f32
    %56 = vector.broadcast %cst_25 : f32 to vector<8x32xf32>
    %57 = arith.mulf %56, %55 : vector<8x32xf32>
    %58 = math.tanh %57 : vector<8x32xf32>
    %cst_26 = arith.constant 1.000000e+00 : f32
    %59 = vector.broadcast %cst_26 : f32 to vector<8x32xf32>
    %60 = arith.addf %58, %59 : vector<8x32xf32>
    %cst_27 = arith.constant 5.000000e-01 : f32
    %61 = vector.broadcast %cst_27 : f32 to vector<8x32xf32>
    %62 = arith.mulf %61, %60 : vector<8x32xf32>
    %63 = vector.extract_strided_slice %46 {offsets = [0, 64], sizes = [8, 32], strides = [1, 1]} : vector<8x128xf32> to vector<8x32xf32>
    %64 = math.tanh %63 : vector<8x32xf32>
    %65 = vector.extract_strided_slice %46 {offsets = [0, 96], sizes = [8, 32], strides = [1, 1]} : vector<8x128xf32> to vector<8x32xf32>
    %cst_28 = arith.constant 5.000000e-01 : f32
    %66 = vector.broadcast %cst_28 : f32 to vector<8x32xf32>
    %67 = arith.mulf %66, %65 : vector<8x32xf32>
    %68 = math.tanh %67 : vector<8x32xf32>
    %cst_29 = arith.constant 1.000000e+00 : f32
    %69 = vector.broadcast %cst_29 : f32 to vector<8x32xf32>
    %70 = arith.addf %68, %69 : vector<8x32xf32>
    %cst_30 = arith.constant 5.000000e-01 : f32
    %71 = vector.broadcast %cst_30 : f32 to vector<8x32xf32>
    %72 = arith.mulf %71, %70 : vector<8x32xf32>
    %73 = arith.mulf %62, %38 : vector<8x32xf32>
    %74 = arith.mulf %54, %64 : vector<8x32xf32>
    %75 = arith.addf %73, %74 : vector<8x32xf32>
    %76 = math.tanh %75 : vector<8x32xf32>
    %77 = arith.mulf %72, %76 : vector<8x32xf32>
    %78 = vector.extract_strided_slice %45 {offsets = [0, 128], sizes = [8, 128], strides = [1, 1]} : vector<8x256xf32> to vector<8x128xf32>
    %79 = vector.extract_strided_slice %78 {offsets = [0, 0], sizes = [8, 32], strides = [1, 1]} : vector<8x128xf32> to vector<8x32xf32>
    %cst_31 = arith.constant 5.000000e-01 : f32
    %80 = vector.broadcast %cst_31 : f32 to vector<8x32xf32>
    %81 = arith.mulf %80, %79 : vector<8x32xf32>
    %82 = math.tanh %81 : vector<8x32xf32>
    %cst_32 = arith.constant 1.000000e+00 : f32
    %83 = vector.broadcast %cst_32 : f32 to vector<8x32xf32>
    %84 = arith.addf %82, %83 : vector<8x32xf32>
    %cst_33 = arith.constant 5.000000e-01 : f32
    %85 = vector.broadcast %cst_33 : f32 to vector<8x32xf32>
    %86 = arith.mulf %85, %84 : vector<8x32xf32>
    %87 = vector.extract_strided_slice %78 {offsets = [0, 32], sizes = [8, 32], strides = [1, 1]} : vector<8x128xf32> to vector<8x32xf32>
    %cst_34 = arith.constant 5.000000e-01 : f32
    %88 = vector.broadcast %cst_34 : f32 to vector<8x32xf32>
    %89 = arith.mulf %88, %87 : vector<8x32xf32>
    %90 = math.tanh %89 : vector<8x32xf32>
    %cst_35 = arith.constant 1.000000e+00 : f32
    %91 = vector.broadcast %cst_35 : f32 to vector<8x32xf32>
    %92 = arith.addf %90, %91 : vector<8x32xf32>
    %cst_36 = arith.constant 5.000000e-01 : f32
    %93 = vector.broadcast %cst_36 : f32 to vector<8x32xf32>
    %94 = arith.mulf %93, %92 : vector<8x32xf32>
    %95 = vector.extract_strided_slice %78 {offsets = [0, 64], sizes = [8, 32], strides = [1, 1]} : vector<8x128xf32> to vector<8x32xf32>
    %96 = math.tanh %95 : vector<8x32xf32>
    %97 = vector.extract_strided_slice %78 {offsets = [0, 96], sizes = [8, 32], strides = [1, 1]} : vector<8x128xf32> to vector<8x32xf32>
    %cst_37 = arith.constant 5.000000e-01 : f32
    %98 = vector.broadcast %cst_37 : f32 to vector<8x32xf32>
    %99 = arith.mulf %98, %97 : vector<8x32xf32>
    %100 = math.tanh %99 : vector<8x32xf32>
    %cst_38 = arith.constant 1.000000e+00 : f32
    %101 = vector.broadcast %cst_38 : f32 to vector<8x32xf32>
    %102 = arith.addf %100, %101 : vector<8x32xf32>
    %cst_39 = arith.constant 5.000000e-01 : f32
    %103 = vector.broadcast %cst_39 : f32 to vector<8x32xf32>
    %104 = arith.mulf %103, %102 : vector<8x32xf32>
    %105 = arith.mulf %94, %39 : vector<8x32xf32>
    %106 = arith.mulf %86, %96 : vector<8x32xf32>
    %107 = arith.addf %105, %106 : vector<8x32xf32>
    %108 = math.tanh %107 : vector<8x32xf32>
    %109 = arith.mulf %104, %108 : vector<8x32xf32>
    %110 = tpu.concatenate %77, %109 in 1 : vector<8x32xf32>, vector<8x32xf32> -> vector<8x64xf32>
    %c0_40 = arith.constant 0 : index
    %c0_41 = arith.constant 0 : index
    %111 = vector.load %arg8[%c0_40, %c0_41] : memref<448x16xf32, #tpu.memory_space<vmem>>, vector<64x16xf32>
    %cst_42 = arith.constant dense<0.000000e+00> : vector<8x16xf32>
    %112 = tpu.matmul %110, %111, %cst_42 {dimension_numbers = #tpu.dot_dimension_numbers<[1], [0], [0], [1], [0, 0, 1, 1], [], []>} : vector<8x64xf32>, vector<64x16xf32>, vector<8x16xf32> -> vector<8x16xf32>
    %113 = arith.addf %40, %112 : vector<8x16xf32>
    %114 = vector.extract_strided_slice %35 {offsets = [8, 0], sizes = [8, 128], strides = [1, 1]} : vector<56x256xf32> to vector<8x128xf32>
    %115 = vector.extract_strided_slice %35 {offsets = [40, 128], sizes = [8, 128], strides = [1, 1]} : vector<56x256xf32> to vector<8x128xf32>
    %116 = tpu.concatenate %114, %115 in 1 : vector<8x128xf32>, vector<8x128xf32> -> vector<8x256xf32>
    %cst_43 = arith.constant dense<0.000000e+00> : vector<8x256xf32>
    %117 = tpu.matmul %110, %36, %cst_43 {dimension_numbers = #tpu.dot_dimension_numbers<[1], [0], [0], [1], [0, 0, 1, 1], [], []>} : vector<8x64xf32>, vector<64x256xf32>, vector<8x256xf32> -> vector<8x256xf32>
    %118 = arith.addf %116, %117 : vector<8x256xf32>
    %119 = vector.extract_strided_slice %118 {offsets = [0, 0], sizes = [8, 128], strides = [1, 1]} : vector<8x256xf32> to vector<8x128xf32>
    %120 = vector.extract_strided_slice %119 {offsets = [0, 0], sizes = [8, 32], strides = [1, 1]} : vector<8x128xf32> to vector<8x32xf32>
    %cst_44 = arith.constant 5.000000e-01 : f32
    %121 = vector.broadcast %cst_44 : f32 to vector<8x32xf32>
    %122 = arith.mulf %121, %120 : vector<8x32xf32>
    %123 = math.tanh %122 : vector<8x32xf32>
    %cst_45 = arith.constant 1.000000e+00 : f32
    %124 = vector.broadcast %cst_45 : f32 to vector<8x32xf32>
    %125 = arith.addf %123, %124 : vector<8x32xf32>
    %cst_46 = arith.constant 5.000000e-01 : f32
    %126 = vector.broadcast %cst_46 : f32 to vector<8x32xf32>
    %127 = arith.mulf %126, %125 : vector<8x32xf32>
    %128 = vector.extract_strided_slice %119 {offsets = [0, 32], sizes = [8, 32], strides = [1, 1]} : vector<8x128xf32> to vector<8x32xf32>
    %cst_47 = arith.constant 5.000000e-01 : f32
    %129 = vector.broadcast %cst_47 : f32 to vector<8x32xf32>
    %130 = arith.mulf %129, %128 : vector<8x32xf32>
    %131 = math.tanh %130 : vector<8x32xf32>
    %cst_48 = arith.constant 1.000000e+00 : f32
    %132 = vector.broadcast %cst_48 : f32 to vector<8x32xf32>
    %133 = arith.addf %131, %132 : vector<8x32xf32>
    %cst_49 = arith.constant 5.000000e-01 : f32
    %134 = vector.broadcast %cst_49 : f32 to vector<8x32xf32>
    %135 = arith.mulf %134, %133 : vector<8x32xf32>
    %136 = vector.extract_strided_slice %119 {offsets = [0, 64], sizes = [8, 32], strides = [1, 1]} : vector<8x128xf32> to vector<8x32xf32>
    %137 = math.tanh %136 : vector<8x32xf32>
    %138 = vector.extract_strided_slice %119 {offsets = [0, 96], sizes = [8, 32], strides = [1, 1]} : vector<8x128xf32> to vector<8x32xf32>
    %cst_50 = arith.constant 5.000000e-01 : f32
    %139 = vector.broadcast %cst_50 : f32 to vector<8x32xf32>
    %140 = arith.mulf %139, %138 : vector<8x32xf32>
    %141 = math.tanh %140 : vector<8x32xf32>
    %cst_51 = arith.constant 1.000000e+00 : f32
    %142 = vector.broadcast %cst_51 : f32 to vector<8x32xf32>
    %143 = arith.addf %141, %142 : vector<8x32xf32>
    %cst_52 = arith.constant 5.000000e-01 : f32
    %144 = vector.broadcast %cst_52 : f32 to vector<8x32xf32>
    %145 = arith.mulf %144, %143 : vector<8x32xf32>
    %146 = arith.mulf %135, %75 : vector<8x32xf32>
    %147 = arith.mulf %127, %137 : vector<8x32xf32>
    %148 = arith.addf %146, %147 : vector<8x32xf32>
    %149 = math.tanh %148 : vector<8x32xf32>
    %150 = arith.mulf %145, %149 : vector<8x32xf32>
    %151 = vector.extract_strided_slice %118 {offsets = [0, 128], sizes = [8, 128], strides = [1, 1]} : vector<8x256xf32> to vector<8x128xf32>
    %152 = vector.extract_strided_slice %151 {offsets = [0, 0], sizes = [8, 32], strides = [1, 1]} : vector<8x128xf32> to vector<8x32xf32>
    %cst_53 = arith.constant 5.000000e-01 : f32
    %153 = vector.broadcast %cst_53 : f32 to vector<8x32xf32>
    %154 = arith.mulf %153, %152 : vector<8x32xf32>
    %155 = math.tanh %154 : vector<8x32xf32>
    %cst_54 = arith.constant 1.000000e+00 : f32
    %156 = vector.broadcast %cst_54 : f32 to vector<8x32xf32>
    %157 = arith.addf %155, %156 : vector<8x32xf32>
    %cst_55 = arith.constant 5.000000e-01 : f32
    %158 = vector.broadcast %cst_55 : f32 to vector<8x32xf32>
    %159 = arith.mulf %158, %157 : vector<8x32xf32>
    %160 = vector.extract_strided_slice %151 {offsets = [0, 32], sizes = [8, 32], strides = [1, 1]} : vector<8x128xf32> to vector<8x32xf32>
    %cst_56 = arith.constant 5.000000e-01 : f32
    %161 = vector.broadcast %cst_56 : f32 to vector<8x32xf32>
    %162 = arith.mulf %161, %160 : vector<8x32xf32>
    %163 = math.tanh %162 : vector<8x32xf32>
    %cst_57 = arith.constant 1.000000e+00 : f32
    %164 = vector.broadcast %cst_57 : f32 to vector<8x32xf32>
    %165 = arith.addf %163, %164 : vector<8x32xf32>
    %cst_58 = arith.constant 5.000000e-01 : f32
    %166 = vector.broadcast %cst_58 : f32 to vector<8x32xf32>
    %167 = arith.mulf %166, %165 : vector<8x32xf32>
    %168 = vector.extract_strided_slice %151 {offsets = [0, 64], sizes = [8, 32], strides = [1, 1]} : vector<8x128xf32> to vector<8x32xf32>
    %169 = math.tanh %168 : vector<8x32xf32>
    %170 = vector.extract_strided_slice %151 {offsets = [0, 96], sizes = [8, 32], strides = [1, 1]} : vector<8x128xf32> to vector<8x32xf32>
    %cst_59 = arith.constant 5.000000e-01 : f32
    %171 = vector.broadcast %cst_59 : f32 to vector<8x32xf32>
    %172 = arith.mulf %171, %170 : vector<8x32xf32>
    %173 = math.tanh %172 : vector<8x32xf32>
    %cst_60 = arith.constant 1.000000e+00 : f32
    %174 = vector.broadcast %cst_60 : f32 to vector<8x32xf32>
    %175 = arith.addf %173, %174 : vector<8x32xf32>
    %cst_61 = arith.constant 5.000000e-01 : f32
    %176 = vector.broadcast %cst_61 : f32 to vector<8x32xf32>
    %177 = arith.mulf %176, %175 : vector<8x32xf32>
    %178 = arith.mulf %167, %107 : vector<8x32xf32>
    %179 = arith.mulf %159, %169 : vector<8x32xf32>
    %180 = arith.addf %178, %179 : vector<8x32xf32>
    %181 = math.tanh %180 : vector<8x32xf32>
    %182 = arith.mulf %177, %181 : vector<8x32xf32>
    %183 = tpu.concatenate %150, %182 in 1 : vector<8x32xf32>, vector<8x32xf32> -> vector<8x64xf32>
    %c64 = arith.constant 64 : index
    %c0_62 = arith.constant 0 : index
    %184 = vector.load %arg8[%c64, %c0_62] : memref<448x16xf32, #tpu.memory_space<vmem>>, vector<64x16xf32>
    %cst_63 = arith.constant dense<0.000000e+00> : vector<8x16xf32>
    %185 = tpu.matmul %183, %184, %cst_63 {dimension_numbers = #tpu.dot_dimension_numbers<[1], [0], [0], [1], [0, 0, 1, 1], [], []>} : vector<8x64xf32>, vector<64x16xf32>, vector<8x16xf32> -> vector<8x16xf32>
    %186 = arith.addf %113, %185 : vector<8x16xf32>
    %187 = vector.extract_strided_slice %35 {offsets = [16, 0], sizes = [8, 128], strides = [1, 1]} : vector<56x256xf32> to vector<8x128xf32>
    %188 = vector.extract_strided_slice %35 {offsets = [32, 128], sizes = [8, 128], strides = [1, 1]} : vector<56x256xf32> to vector<8x128xf32>
    %189 = tpu.concatenate %187, %188 in 1 : vector<8x128xf32>, vector<8x128xf32> -> vector<8x256xf32>
    %cst_64 = arith.constant dense<0.000000e+00> : vector<8x256xf32>
    %190 = tpu.matmul %183, %36, %cst_64 {dimension_numbers = #tpu.dot_dimension_numbers<[1], [0], [0], [1], [0, 0, 1, 1], [], []>} : vector<8x64xf32>, vector<64x256xf32>, vector<8x256xf32> -> vector<8x256xf32>
    %191 = arith.addf %189, %190 : vector<8x256xf32>
    %192 = vector.extract_strided_slice %191 {offsets = [0, 0], sizes = [8, 128], strides = [1, 1]} : vector<8x256xf32> to vector<8x128xf32>
    %193 = vector.extract_strided_slice %192 {offsets = [0, 0], sizes = [8, 32], strides = [1, 1]} : vector<8x128xf32> to vector<8x32xf32>
    %cst_65 = arith.constant 5.000000e-01 : f32
    %194 = vector.broadcast %cst_65 : f32 to vector<8x32xf32>
    %195 = arith.mulf %194, %193 : vector<8x32xf32>
    %196 = math.tanh %195 : vector<8x32xf32>
    %cst_66 = arith.constant 1.000000e+00 : f32
    %197 = vector.broadcast %cst_66 : f32 to vector<8x32xf32>
    %198 = arith.addf %196, %197 : vector<8x32xf32>
    %cst_67 = arith.constant 5.000000e-01 : f32
    %199 = vector.broadcast %cst_67 : f32 to vector<8x32xf32>
    %200 = arith.mulf %199, %198 : vector<8x32xf32>
    %201 = vector.extract_strided_slice %192 {offsets = [0, 32], sizes = [8, 32], strides = [1, 1]} : vector<8x128xf32> to vector<8x32xf32>
    %cst_68 = arith.constant 5.000000e-01 : f32
    %202 = vector.broadcast %cst_68 : f32 to vector<8x32xf32>
    %203 = arith.mulf %202, %201 : vector<8x32xf32>
    %204 = math.tanh %203 : vector<8x32xf32>
    %cst_69 = arith.constant 1.000000e+00 : f32
    %205 = vector.broadcast %cst_69 : f32 to vector<8x32xf32>
    %206 = arith.addf %204, %205 : vector<8x32xf32>
    %cst_70 = arith.constant 5.000000e-01 : f32
    %207 = vector.broadcast %cst_70 : f32 to vector<8x32xf32>
    %208 = arith.mulf %207, %206 : vector<8x32xf32>
    %209 = vector.extract_strided_slice %192 {offsets = [0, 64], sizes = [8, 32], strides = [1, 1]} : vector<8x128xf32> to vector<8x32xf32>
    %210 = math.tanh %209 : vector<8x32xf32>
    %211 = vector.extract_strided_slice %192 {offsets = [0, 96], sizes = [8, 32], strides = [1, 1]} : vector<8x128xf32> to vector<8x32xf32>
    %cst_71 = arith.constant 5.000000e-01 : f32
    %212 = vector.broadcast %cst_71 : f32 to vector<8x32xf32>
    %213 = arith.mulf %212, %211 : vector<8x32xf32>
    %214 = math.tanh %213 : vector<8x32xf32>
    %cst_72 = arith.constant 1.000000e+00 : f32
    %215 = vector.broadcast %cst_72 : f32 to vector<8x32xf32>
    %216 = arith.addf %214, %215 : vector<8x32xf32>
    %cst_73 = arith.constant 5.000000e-01 : f32
    %217 = vector.broadcast %cst_73 : f32 to vector<8x32xf32>
    %218 = arith.mulf %217, %216 : vector<8x32xf32>
    %219 = arith.mulf %208, %148 : vector<8x32xf32>
    %220 = arith.mulf %200, %210 : vector<8x32xf32>
    %221 = arith.addf %219, %220 : vector<8x32xf32>
    %222 = math.tanh %221 : vector<8x32xf32>
    %223 = arith.mulf %218, %222 : vector<8x32xf32>
    %224 = vector.extract_strided_slice %191 {offsets = [0, 128], sizes = [8, 128], strides = [1, 1]} : vector<8x256xf32> to vector<8x128xf32>
    %225 = vector.extract_strided_slice %224 {offsets = [0, 0], sizes = [8, 32], strides = [1, 1]} : vector<8x128xf32> to vector<8x32xf32>
    %cst_74 = arith.constant 5.000000e-01 : f32
    %226 = vector.broadcast %cst_74 : f32 to vector<8x32xf32>
    %227 = arith.mulf %226, %225 : vector<8x32xf32>
    %228 = math.tanh %227 : vector<8x32xf32>
    %cst_75 = arith.constant 1.000000e+00 : f32
    %229 = vector.broadcast %cst_75 : f32 to vector<8x32xf32>
    %230 = arith.addf %228, %229 : vector<8x32xf32>
    %cst_76 = arith.constant 5.000000e-01 : f32
    %231 = vector.broadcast %cst_76 : f32 to vector<8x32xf32>
    %232 = arith.mulf %231, %230 : vector<8x32xf32>
    %233 = vector.extract_strided_slice %224 {offsets = [0, 32], sizes = [8, 32], strides = [1, 1]} : vector<8x128xf32> to vector<8x32xf32>
    %cst_77 = arith.constant 5.000000e-01 : f32
    %234 = vector.broadcast %cst_77 : f32 to vector<8x32xf32>
    %235 = arith.mulf %234, %233 : vector<8x32xf32>
    %236 = math.tanh %235 : vector<8x32xf32>
    %cst_78 = arith.constant 1.000000e+00 : f32
    %237 = vector.broadcast %cst_78 : f32 to vector<8x32xf32>
    %238 = arith.addf %236, %237 : vector<8x32xf32>
    %cst_79 = arith.constant 5.000000e-01 : f32
    %239 = vector.broadcast %cst_79 : f32 to vector<8x32xf32>
    %240 = arith.mulf %239, %238 : vector<8x32xf32>
    %241 = vector.extract_strided_slice %224 {offsets = [0, 64], sizes = [8, 32], strides = [1, 1]} : vector<8x128xf32> to vector<8x32xf32>
    %242 = math.tanh %241 : vector<8x32xf32>
    %243 = vector.extract_strided_slice %224 {offsets = [0, 96], sizes = [8, 32], strides = [1, 1]} : vector<8x128xf32> to vector<8x32xf32>
    %cst_80 = arith.constant 5.000000e-01 : f32
    %244 = vector.broadcast %cst_80 : f32 to vector<8x32xf32>
    %245 = arith.mulf %244, %243 : vector<8x32xf32>
    %246 = math.tanh %245 : vector<8x32xf32>
    %cst_81 = arith.constant 1.000000e+00 : f32
    %247 = vector.broadcast %cst_81 : f32 to vector<8x32xf32>
    %248 = arith.addf %246, %247 : vector<8x32xf32>
    %cst_82 = arith.constant 5.000000e-01 : f32
    %249 = vector.broadcast %cst_82 : f32 to vector<8x32xf32>
    %250 = arith.mulf %249, %248 : vector<8x32xf32>
    %251 = arith.mulf %240, %180 : vector<8x32xf32>
    %252 = arith.mulf %232, %242 : vector<8x32xf32>
    %253 = arith.addf %251, %252 : vector<8x32xf32>
    %254 = math.tanh %253 : vector<8x32xf32>
    %255 = arith.mulf %250, %254 : vector<8x32xf32>
    %256 = tpu.concatenate %223, %255 in 1 : vector<8x32xf32>, vector<8x32xf32> -> vector<8x64xf32>
    %c128 = arith.constant 128 : index
    %c0_83 = arith.constant 0 : index
    %257 = vector.load %arg8[%c128, %c0_83] : memref<448x16xf32, #tpu.memory_space<vmem>>, vector<64x16xf32>
    %cst_84 = arith.constant dense<0.000000e+00> : vector<8x16xf32>
    %258 = tpu.matmul %256, %257, %cst_84 {dimension_numbers = #tpu.dot_dimension_numbers<[1], [0], [0], [1], [0, 0, 1, 1], [], []>} : vector<8x64xf32>, vector<64x16xf32>, vector<8x16xf32> -> vector<8x16xf32>
    %259 = arith.addf %186, %258 : vector<8x16xf32>
    %260 = vector.extract_strided_slice %35 {offsets = [24, 0], sizes = [8, 128], strides = [1, 1]} : vector<56x256xf32> to vector<8x128xf32>
    %261 = vector.extract_strided_slice %35 {offsets = [24, 128], sizes = [8, 128], strides = [1, 1]} : vector<56x256xf32> to vector<8x128xf32>
    %262 = tpu.concatenate %260, %261 in 1 : vector<8x128xf32>, vector<8x128xf32> -> vector<8x256xf32>
    %cst_85 = arith.constant dense<0.000000e+00> : vector<8x256xf32>
    %263 = tpu.matmul %256, %36, %cst_85 {dimension_numbers = #tpu.dot_dimension_numbers<[1], [0], [0], [1], [0, 0, 1, 1], [], []>} : vector<8x64xf32>, vector<64x256xf32>, vector<8x256xf32> -> vector<8x256xf32>
    %264 = arith.addf %262, %263 : vector<8x256xf32>
    %265 = vector.extract_strided_slice %264 {offsets = [0, 0], sizes = [8, 128], strides = [1, 1]} : vector<8x256xf32> to vector<8x128xf32>
    %266 = vector.extract_strided_slice %265 {offsets = [0, 0], sizes = [8, 32], strides = [1, 1]} : vector<8x128xf32> to vector<8x32xf32>
    %cst_86 = arith.constant 5.000000e-01 : f32
    %267 = vector.broadcast %cst_86 : f32 to vector<8x32xf32>
    %268 = arith.mulf %267, %266 : vector<8x32xf32>
    %269 = math.tanh %268 : vector<8x32xf32>
    %cst_87 = arith.constant 1.000000e+00 : f32
    %270 = vector.broadcast %cst_87 : f32 to vector<8x32xf32>
    %271 = arith.addf %269, %270 : vector<8x32xf32>
    %cst_88 = arith.constant 5.000000e-01 : f32
    %272 = vector.broadcast %cst_88 : f32 to vector<8x32xf32>
    %273 = arith.mulf %272, %271 : vector<8x32xf32>
    %274 = vector.extract_strided_slice %265 {offsets = [0, 32], sizes = [8, 32], strides = [1, 1]} : vector<8x128xf32> to vector<8x32xf32>
    %cst_89 = arith.constant 5.000000e-01 : f32
    %275 = vector.broadcast %cst_89 : f32 to vector<8x32xf32>
    %276 = arith.mulf %275, %274 : vector<8x32xf32>
    %277 = math.tanh %276 : vector<8x32xf32>
    %cst_90 = arith.constant 1.000000e+00 : f32
    %278 = vector.broadcast %cst_90 : f32 to vector<8x32xf32>
    %279 = arith.addf %277, %278 : vector<8x32xf32>
    %cst_91 = arith.constant 5.000000e-01 : f32
    %280 = vector.broadcast %cst_91 : f32 to vector<8x32xf32>
    %281 = arith.mulf %280, %279 : vector<8x32xf32>
    %282 = vector.extract_strided_slice %265 {offsets = [0, 64], sizes = [8, 32], strides = [1, 1]} : vector<8x128xf32> to vector<8x32xf32>
    %283 = math.tanh %282 : vector<8x32xf32>
    %284 = vector.extract_strided_slice %265 {offsets = [0, 96], sizes = [8, 32], strides = [1, 1]} : vector<8x128xf32> to vector<8x32xf32>
    %cst_92 = arith.constant 5.000000e-01 : f32
    %285 = vector.broadcast %cst_92 : f32 to vector<8x32xf32>
    %286 = arith.mulf %285, %284 : vector<8x32xf32>
    %287 = math.tanh %286 : vector<8x32xf32>
    %cst_93 = arith.constant 1.000000e+00 : f32
    %288 = vector.broadcast %cst_93 : f32 to vector<8x32xf32>
    %289 = arith.addf %287, %288 : vector<8x32xf32>
    %cst_94 = arith.constant 5.000000e-01 : f32
    %290 = vector.broadcast %cst_94 : f32 to vector<8x32xf32>
    %291 = arith.mulf %290, %289 : vector<8x32xf32>
    %292 = arith.mulf %281, %221 : vector<8x32xf32>
    %293 = arith.mulf %273, %283 : vector<8x32xf32>
    %294 = arith.addf %292, %293 : vector<8x32xf32>
    %295 = math.tanh %294 : vector<8x32xf32>
    %296 = arith.mulf %291, %295 : vector<8x32xf32>
    %297 = vector.extract_strided_slice %264 {offsets = [0, 128], sizes = [8, 128], strides = [1, 1]} : vector<8x256xf32> to vector<8x128xf32>
    %298 = vector.extract_strided_slice %297 {offsets = [0, 0], sizes = [8, 32], strides = [1, 1]} : vector<8x128xf32> to vector<8x32xf32>
    %cst_95 = arith.constant 5.000000e-01 : f32
    %299 = vector.broadcast %cst_95 : f32 to vector<8x32xf32>
    %300 = arith.mulf %299, %298 : vector<8x32xf32>
    %301 = math.tanh %300 : vector<8x32xf32>
    %cst_96 = arith.constant 1.000000e+00 : f32
    %302 = vector.broadcast %cst_96 : f32 to vector<8x32xf32>
    %303 = arith.addf %301, %302 : vector<8x32xf32>
    %cst_97 = arith.constant 5.000000e-01 : f32
    %304 = vector.broadcast %cst_97 : f32 to vector<8x32xf32>
    %305 = arith.mulf %304, %303 : vector<8x32xf32>
    %306 = vector.extract_strided_slice %297 {offsets = [0, 32], sizes = [8, 32], strides = [1, 1]} : vector<8x128xf32> to vector<8x32xf32>
    %cst_98 = arith.constant 5.000000e-01 : f32
    %307 = vector.broadcast %cst_98 : f32 to vector<8x32xf32>
    %308 = arith.mulf %307, %306 : vector<8x32xf32>
    %309 = math.tanh %308 : vector<8x32xf32>
    %cst_99 = arith.constant 1.000000e+00 : f32
    %310 = vector.broadcast %cst_99 : f32 to vector<8x32xf32>
    %311 = arith.addf %309, %310 : vector<8x32xf32>
    %cst_100 = arith.constant 5.000000e-01 : f32
    %312 = vector.broadcast %cst_100 : f32 to vector<8x32xf32>
    %313 = arith.mulf %312, %311 : vector<8x32xf32>
    %314 = vector.extract_strided_slice %297 {offsets = [0, 64], sizes = [8, 32], strides = [1, 1]} : vector<8x128xf32> to vector<8x32xf32>
    %315 = math.tanh %314 : vector<8x32xf32>
    %316 = vector.extract_strided_slice %297 {offsets = [0, 96], sizes = [8, 32], strides = [1, 1]} : vector<8x128xf32> to vector<8x32xf32>
    %cst_101 = arith.constant 5.000000e-01 : f32
    %317 = vector.broadcast %cst_101 : f32 to vector<8x32xf32>
    %318 = arith.mulf %317, %316 : vector<8x32xf32>
    %319 = math.tanh %318 : vector<8x32xf32>
    %cst_102 = arith.constant 1.000000e+00 : f32
    %320 = vector.broadcast %cst_102 : f32 to vector<8x32xf32>
    %321 = arith.addf %319, %320 : vector<8x32xf32>
    %cst_103 = arith.constant 5.000000e-01 : f32
    %322 = vector.broadcast %cst_103 : f32 to vector<8x32xf32>
    %323 = arith.mulf %322, %321 : vector<8x32xf32>
    %324 = arith.mulf %313, %253 : vector<8x32xf32>
    %325 = arith.mulf %305, %315 : vector<8x32xf32>
    %326 = arith.addf %324, %325 : vector<8x32xf32>
    %327 = math.tanh %326 : vector<8x32xf32>
    %328 = arith.mulf %323, %327 : vector<8x32xf32>
    %329 = tpu.concatenate %296, %328 in 1 : vector<8x32xf32>, vector<8x32xf32> -> vector<8x64xf32>
    %c192 = arith.constant 192 : index
    %c0_104 = arith.constant 0 : index
    %330 = vector.load %arg8[%c192, %c0_104] : memref<448x16xf32, #tpu.memory_space<vmem>>, vector<64x16xf32>
    %cst_105 = arith.constant dense<0.000000e+00> : vector<8x16xf32>
    %331 = tpu.matmul %329, %330, %cst_105 {dimension_numbers = #tpu.dot_dimension_numbers<[1], [0], [0], [1], [0, 0, 1, 1], [], []>} : vector<8x64xf32>, vector<64x16xf32>, vector<8x16xf32> -> vector<8x16xf32>
    %332 = arith.addf %259, %331 : vector<8x16xf32>
    %333 = vector.extract_strided_slice %35 {offsets = [32, 0], sizes = [8, 128], strides = [1, 1]} : vector<56x256xf32> to vector<8x128xf32>
    %334 = vector.extract_strided_slice %35 {offsets = [16, 128], sizes = [8, 128], strides = [1, 1]} : vector<56x256xf32> to vector<8x128xf32>
    %335 = tpu.concatenate %333, %334 in 1 : vector<8x128xf32>, vector<8x128xf32> -> vector<8x256xf32>
    %cst_106 = arith.constant dense<0.000000e+00> : vector<8x256xf32>
    %336 = tpu.matmul %329, %36, %cst_106 {dimension_numbers = #tpu.dot_dimension_numbers<[1], [0], [0], [1], [0, 0, 1, 1], [], []>} : vector<8x64xf32>, vector<64x256xf32>, vector<8x256xf32> -> vector<8x256xf32>
    %337 = arith.addf %335, %336 : vector<8x256xf32>
    %338 = vector.extract_strided_slice %337 {offsets = [0, 0], sizes = [8, 128], strides = [1, 1]} : vector<8x256xf32> to vector<8x128xf32>
    %339 = vector.extract_strided_slice %338 {offsets = [0, 0], sizes = [8, 32], strides = [1, 1]} : vector<8x128xf32> to vector<8x32xf32>
    %cst_107 = arith.constant 5.000000e-01 : f32
    %340 = vector.broadcast %cst_107 : f32 to vector<8x32xf32>
    %341 = arith.mulf %340, %339 : vector<8x32xf32>
    %342 = math.tanh %341 : vector<8x32xf32>
    %cst_108 = arith.constant 1.000000e+00 : f32
    %343 = vector.broadcast %cst_108 : f32 to vector<8x32xf32>
    %344 = arith.addf %342, %343 : vector<8x32xf32>
    %cst_109 = arith.constant 5.000000e-01 : f32
    %345 = vector.broadcast %cst_109 : f32 to vector<8x32xf32>
    %346 = arith.mulf %345, %344 : vector<8x32xf32>
    %347 = vector.extract_strided_slice %338 {offsets = [0, 32], sizes = [8, 32], strides = [1, 1]} : vector<8x128xf32> to vector<8x32xf32>
    %cst_110 = arith.constant 5.000000e-01 : f32
    %348 = vector.broadcast %cst_110 : f32 to vector<8x32xf32>
    %349 = arith.mulf %348, %347 : vector<8x32xf32>
    %350 = math.tanh %349 : vector<8x32xf32>
    %cst_111 = arith.constant 1.000000e+00 : f32
    %351 = vector.broadcast %cst_111 : f32 to vector<8x32xf32>
    %352 = arith.addf %350, %351 : vector<8x32xf32>
    %cst_112 = arith.constant 5.000000e-01 : f32
    %353 = vector.broadcast %cst_112 : f32 to vector<8x32xf32>
    %354 = arith.mulf %353, %352 : vector<8x32xf32>
    %355 = vector.extract_strided_slice %338 {offsets = [0, 64], sizes = [8, 32], strides = [1, 1]} : vector<8x128xf32> to vector<8x32xf32>
    %356 = math.tanh %355 : vector<8x32xf32>
    %357 = vector.extract_strided_slice %338 {offsets = [0, 96], sizes = [8, 32], strides = [1, 1]} : vector<8x128xf32> to vector<8x32xf32>
    %cst_113 = arith.constant 5.000000e-01 : f32
    %358 = vector.broadcast %cst_113 : f32 to vector<8x32xf32>
    %359 = arith.mulf %358, %357 : vector<8x32xf32>
    %360 = math.tanh %359 : vector<8x32xf32>
    %cst_114 = arith.constant 1.000000e+00 : f32
    %361 = vector.broadcast %cst_114 : f32 to vector<8x32xf32>
    %362 = arith.addf %360, %361 : vector<8x32xf32>
    %cst_115 = arith.constant 5.000000e-01 : f32
    %363 = vector.broadcast %cst_115 : f32 to vector<8x32xf32>
    %364 = arith.mulf %363, %362 : vector<8x32xf32>
    %365 = arith.mulf %354, %294 : vector<8x32xf32>
    %366 = arith.mulf %346, %356 : vector<8x32xf32>
    %367 = arith.addf %365, %366 : vector<8x32xf32>
    %368 = math.tanh %367 : vector<8x32xf32>
    %369 = arith.mulf %364, %368 : vector<8x32xf32>
    %370 = vector.extract_strided_slice %337 {offsets = [0, 128], sizes = [8, 128], strides = [1, 1]} : vector<8x256xf32> to vector<8x128xf32>
    %371 = vector.extract_strided_slice %370 {offsets = [0, 0], sizes = [8, 32], strides = [1, 1]} : vector<8x128xf32> to vector<8x32xf32>
    %cst_116 = arith.constant 5.000000e-01 : f32
    %372 = vector.broadcast %cst_116 : f32 to vector<8x32xf32>
    %373 = arith.mulf %372, %371 : vector<8x32xf32>
    %374 = math.tanh %373 : vector<8x32xf32>
    %cst_117 = arith.constant 1.000000e+00 : f32
    %375 = vector.broadcast %cst_117 : f32 to vector<8x32xf32>
    %376 = arith.addf %374, %375 : vector<8x32xf32>
    %cst_118 = arith.constant 5.000000e-01 : f32
    %377 = vector.broadcast %cst_118 : f32 to vector<8x32xf32>
    %378 = arith.mulf %377, %376 : vector<8x32xf32>
    %379 = vector.extract_strided_slice %370 {offsets = [0, 32], sizes = [8, 32], strides = [1, 1]} : vector<8x128xf32> to vector<8x32xf32>
    %cst_119 = arith.constant 5.000000e-01 : f32
    %380 = vector.broadcast %cst_119 : f32 to vector<8x32xf32>
    %381 = arith.mulf %380, %379 : vector<8x32xf32>
    %382 = math.tanh %381 : vector<8x32xf32>
    %cst_120 = arith.constant 1.000000e+00 : f32
    %383 = vector.broadcast %cst_120 : f32 to vector<8x32xf32>
    %384 = arith.addf %382, %383 : vector<8x32xf32>
    %cst_121 = arith.constant 5.000000e-01 : f32
    %385 = vector.broadcast %cst_121 : f32 to vector<8x32xf32>
    %386 = arith.mulf %385, %384 : vector<8x32xf32>
    %387 = vector.extract_strided_slice %370 {offsets = [0, 64], sizes = [8, 32], strides = [1, 1]} : vector<8x128xf32> to vector<8x32xf32>
    %388 = math.tanh %387 : vector<8x32xf32>
    %389 = vector.extract_strided_slice %370 {offsets = [0, 96], sizes = [8, 32], strides = [1, 1]} : vector<8x128xf32> to vector<8x32xf32>
    %cst_122 = arith.constant 5.000000e-01 : f32
    %390 = vector.broadcast %cst_122 : f32 to vector<8x32xf32>
    %391 = arith.mulf %390, %389 : vector<8x32xf32>
    %392 = math.tanh %391 : vector<8x32xf32>
    %cst_123 = arith.constant 1.000000e+00 : f32
    %393 = vector.broadcast %cst_123 : f32 to vector<8x32xf32>
    %394 = arith.addf %392, %393 : vector<8x32xf32>
    %cst_124 = arith.constant 5.000000e-01 : f32
    %395 = vector.broadcast %cst_124 : f32 to vector<8x32xf32>
    %396 = arith.mulf %395, %394 : vector<8x32xf32>
    %397 = arith.mulf %386, %326 : vector<8x32xf32>
    %398 = arith.mulf %378, %388 : vector<8x32xf32>
    %399 = arith.addf %397, %398 : vector<8x32xf32>
    %400 = math.tanh %399 : vector<8x32xf32>
    %401 = arith.mulf %396, %400 : vector<8x32xf32>
    %402 = tpu.concatenate %369, %401 in 1 : vector<8x32xf32>, vector<8x32xf32> -> vector<8x64xf32>
    %c256 = arith.constant 256 : index
    %c0_125 = arith.constant 0 : index
    %403 = vector.load %arg8[%c256, %c0_125] : memref<448x16xf32, #tpu.memory_space<vmem>>, vector<64x16xf32>
    %cst_126 = arith.constant dense<0.000000e+00> : vector<8x16xf32>
    %404 = tpu.matmul %402, %403, %cst_126 {dimension_numbers = #tpu.dot_dimension_numbers<[1], [0], [0], [1], [0, 0, 1, 1], [], []>} : vector<8x64xf32>, vector<64x16xf32>, vector<8x16xf32> -> vector<8x16xf32>
    %405 = arith.addf %332, %404 : vector<8x16xf32>
    %406 = vector.extract_strided_slice %35 {offsets = [40, 0], sizes = [8, 128], strides = [1, 1]} : vector<56x256xf32> to vector<8x128xf32>
    %407 = vector.extract_strided_slice %35 {offsets = [8, 128], sizes = [8, 128], strides = [1, 1]} : vector<56x256xf32> to vector<8x128xf32>
    %408 = tpu.concatenate %406, %407 in 1 : vector<8x128xf32>, vector<8x128xf32> -> vector<8x256xf32>
    %cst_127 = arith.constant dense<0.000000e+00> : vector<8x256xf32>
    %409 = tpu.matmul %402, %36, %cst_127 {dimension_numbers = #tpu.dot_dimension_numbers<[1], [0], [0], [1], [0, 0, 1, 1], [], []>} : vector<8x64xf32>, vector<64x256xf32>, vector<8x256xf32> -> vector<8x256xf32>
    %410 = arith.addf %408, %409 : vector<8x256xf32>
    %411 = vector.extract_strided_slice %410 {offsets = [0, 0], sizes = [8, 128], strides = [1, 1]} : vector<8x256xf32> to vector<8x128xf32>
    %412 = vector.extract_strided_slice %411 {offsets = [0, 0], sizes = [8, 32], strides = [1, 1]} : vector<8x128xf32> to vector<8x32xf32>
    %cst_128 = arith.constant 5.000000e-01 : f32
    %413 = vector.broadcast %cst_128 : f32 to vector<8x32xf32>
    %414 = arith.mulf %413, %412 : vector<8x32xf32>
    %415 = math.tanh %414 : vector<8x32xf32>
    %cst_129 = arith.constant 1.000000e+00 : f32
    %416 = vector.broadcast %cst_129 : f32 to vector<8x32xf32>
    %417 = arith.addf %415, %416 : vector<8x32xf32>
    %cst_130 = arith.constant 5.000000e-01 : f32
    %418 = vector.broadcast %cst_130 : f32 to vector<8x32xf32>
    %419 = arith.mulf %418, %417 : vector<8x32xf32>
    %420 = vector.extract_strided_slice %411 {offsets = [0, 32], sizes = [8, 32], strides = [1, 1]} : vector<8x128xf32> to vector<8x32xf32>
    %cst_131 = arith.constant 5.000000e-01 : f32
    %421 = vector.broadcast %cst_131 : f32 to vector<8x32xf32>
    %422 = arith.mulf %421, %420 : vector<8x32xf32>
    %423 = math.tanh %422 : vector<8x32xf32>
    %cst_132 = arith.constant 1.000000e+00 : f32
    %424 = vector.broadcast %cst_132 : f32 to vector<8x32xf32>
    %425 = arith.addf %423, %424 : vector<8x32xf32>
    %cst_133 = arith.constant 5.000000e-01 : f32
    %426 = vector.broadcast %cst_133 : f32 to vector<8x32xf32>
    %427 = arith.mulf %426, %425 : vector<8x32xf32>
    %428 = vector.extract_strided_slice %411 {offsets = [0, 64], sizes = [8, 32], strides = [1, 1]} : vector<8x128xf32> to vector<8x32xf32>
    %429 = math.tanh %428 : vector<8x32xf32>
    %430 = vector.extract_strided_slice %411 {offsets = [0, 96], sizes = [8, 32], strides = [1, 1]} : vector<8x128xf32> to vector<8x32xf32>
    %cst_134 = arith.constant 5.000000e-01 : f32
    %431 = vector.broadcast %cst_134 : f32 to vector<8x32xf32>
    %432 = arith.mulf %431, %430 : vector<8x32xf32>
    %433 = math.tanh %432 : vector<8x32xf32>
    %cst_135 = arith.constant 1.000000e+00 : f32
    %434 = vector.broadcast %cst_135 : f32 to vector<8x32xf32>
    %435 = arith.addf %433, %434 : vector<8x32xf32>
    %cst_136 = arith.constant 5.000000e-01 : f32
    %436 = vector.broadcast %cst_136 : f32 to vector<8x32xf32>
    %437 = arith.mulf %436, %435 : vector<8x32xf32>
    %438 = arith.mulf %427, %367 : vector<8x32xf32>
    %439 = arith.mulf %419, %429 : vector<8x32xf32>
    %440 = arith.addf %438, %439 : vector<8x32xf32>
    %441 = math.tanh %440 : vector<8x32xf32>
    %442 = arith.mulf %437, %441 : vector<8x32xf32>
    %443 = vector.extract_strided_slice %410 {offsets = [0, 128], sizes = [8, 128], strides = [1, 1]} : vector<8x256xf32> to vector<8x128xf32>
    %444 = vector.extract_strided_slice %443 {offsets = [0, 0], sizes = [8, 32], strides = [1, 1]} : vector<8x128xf32> to vector<8x32xf32>
    %cst_137 = arith.constant 5.000000e-01 : f32
    %445 = vector.broadcast %cst_137 : f32 to vector<8x32xf32>
    %446 = arith.mulf %445, %444 : vector<8x32xf32>
    %447 = math.tanh %446 : vector<8x32xf32>
    %cst_138 = arith.constant 1.000000e+00 : f32
    %448 = vector.broadcast %cst_138 : f32 to vector<8x32xf32>
    %449 = arith.addf %447, %448 : vector<8x32xf32>
    %cst_139 = arith.constant 5.000000e-01 : f32
    %450 = vector.broadcast %cst_139 : f32 to vector<8x32xf32>
    %451 = arith.mulf %450, %449 : vector<8x32xf32>
    %452 = vector.extract_strided_slice %443 {offsets = [0, 32], sizes = [8, 32], strides = [1, 1]} : vector<8x128xf32> to vector<8x32xf32>
    %cst_140 = arith.constant 5.000000e-01 : f32
    %453 = vector.broadcast %cst_140 : f32 to vector<8x32xf32>
    %454 = arith.mulf %453, %452 : vector<8x32xf32>
    %455 = math.tanh %454 : vector<8x32xf32>
    %cst_141 = arith.constant 1.000000e+00 : f32
    %456 = vector.broadcast %cst_141 : f32 to vector<8x32xf32>
    %457 = arith.addf %455, %456 : vector<8x32xf32>
    %cst_142 = arith.constant 5.000000e-01 : f32
    %458 = vector.broadcast %cst_142 : f32 to vector<8x32xf32>
    %459 = arith.mulf %458, %457 : vector<8x32xf32>
    %460 = vector.extract_strided_slice %443 {offsets = [0, 64], sizes = [8, 32], strides = [1, 1]} : vector<8x128xf32> to vector<8x32xf32>
    %461 = math.tanh %460 : vector<8x32xf32>
    %462 = vector.extract_strided_slice %443 {offsets = [0, 96], sizes = [8, 32], strides = [1, 1]} : vector<8x128xf32> to vector<8x32xf32>
    %cst_143 = arith.constant 5.000000e-01 : f32
    %463 = vector.broadcast %cst_143 : f32 to vector<8x32xf32>
    %464 = arith.mulf %463, %462 : vector<8x32xf32>
    %465 = math.tanh %464 : vector<8x32xf32>
    %cst_144 = arith.constant 1.000000e+00 : f32
    %466 = vector.broadcast %cst_144 : f32 to vector<8x32xf32>
    %467 = arith.addf %465, %466 : vector<8x32xf32>
    %cst_145 = arith.constant 5.000000e-01 : f32
    %468 = vector.broadcast %cst_145 : f32 to vector<8x32xf32>
    %469 = arith.mulf %468, %467 : vector<8x32xf32>
    %470 = arith.mulf %459, %399 : vector<8x32xf32>
    %471 = arith.mulf %451, %461 : vector<8x32xf32>
    %472 = arith.addf %470, %471 : vector<8x32xf32>
    %473 = math.tanh %472 : vector<8x32xf32>
    %474 = arith.mulf %469, %473 : vector<8x32xf32>
    %475 = tpu.concatenate %442, %474 in 1 : vector<8x32xf32>, vector<8x32xf32> -> vector<8x64xf32>
    %c320 = arith.constant 320 : index
    %c0_146 = arith.constant 0 : index
    %476 = vector.load %arg8[%c320, %c0_146] : memref<448x16xf32, #tpu.memory_space<vmem>>, vector<64x16xf32>
    %cst_147 = arith.constant dense<0.000000e+00> : vector<8x16xf32>
    %477 = tpu.matmul %475, %476, %cst_147 {dimension_numbers = #tpu.dot_dimension_numbers<[1], [0], [0], [1], [0, 0, 1, 1], [], []>} : vector<8x64xf32>, vector<64x16xf32>, vector<8x16xf32> -> vector<8x16xf32>
    %478 = arith.addf %405, %477 : vector<8x16xf32>
    %479 = vector.extract_strided_slice %35 {offsets = [48, 0], sizes = [8, 128], strides = [1, 1]} : vector<56x256xf32> to vector<8x128xf32>
    %480 = vector.extract_strided_slice %35 {offsets = [0, 128], sizes = [8, 128], strides = [1, 1]} : vector<56x256xf32> to vector<8x128xf32>
    %481 = tpu.concatenate %479, %480 in 1 : vector<8x128xf32>, vector<8x128xf32> -> vector<8x256xf32>
    %cst_148 = arith.constant dense<0.000000e+00> : vector<8x256xf32>
    %482 = tpu.matmul %475, %36, %cst_148 {dimension_numbers = #tpu.dot_dimension_numbers<[1], [0], [0], [1], [0, 0, 1, 1], [], []>} : vector<8x64xf32>, vector<64x256xf32>, vector<8x256xf32> -> vector<8x256xf32>
    %483 = arith.addf %481, %482 : vector<8x256xf32>
    %484 = vector.extract_strided_slice %483 {offsets = [0, 0], sizes = [8, 128], strides = [1, 1]} : vector<8x256xf32> to vector<8x128xf32>
    %485 = vector.extract_strided_slice %484 {offsets = [0, 0], sizes = [8, 32], strides = [1, 1]} : vector<8x128xf32> to vector<8x32xf32>
    %cst_149 = arith.constant 5.000000e-01 : f32
    %486 = vector.broadcast %cst_149 : f32 to vector<8x32xf32>
    %487 = arith.mulf %486, %485 : vector<8x32xf32>
    %488 = math.tanh %487 : vector<8x32xf32>
    %cst_150 = arith.constant 1.000000e+00 : f32
    %489 = vector.broadcast %cst_150 : f32 to vector<8x32xf32>
    %490 = arith.addf %488, %489 : vector<8x32xf32>
    %cst_151 = arith.constant 5.000000e-01 : f32
    %491 = vector.broadcast %cst_151 : f32 to vector<8x32xf32>
    %492 = arith.mulf %491, %490 : vector<8x32xf32>
    %493 = vector.extract_strided_slice %484 {offsets = [0, 32], sizes = [8, 32], strides = [1, 1]} : vector<8x128xf32> to vector<8x32xf32>
    %cst_152 = arith.constant 5.000000e-01 : f32
    %494 = vector.broadcast %cst_152 : f32 to vector<8x32xf32>
    %495 = arith.mulf %494, %493 : vector<8x32xf32>
    %496 = math.tanh %495 : vector<8x32xf32>
    %cst_153 = arith.constant 1.000000e+00 : f32
    %497 = vector.broadcast %cst_153 : f32 to vector<8x32xf32>
    %498 = arith.addf %496, %497 : vector<8x32xf32>
    %cst_154 = arith.constant 5.000000e-01 : f32
    %499 = vector.broadcast %cst_154 : f32 to vector<8x32xf32>
    %500 = arith.mulf %499, %498 : vector<8x32xf32>
    %501 = vector.extract_strided_slice %484 {offsets = [0, 64], sizes = [8, 32], strides = [1, 1]} : vector<8x128xf32> to vector<8x32xf32>
    %502 = math.tanh %501 : vector<8x32xf32>
    %503 = vector.extract_strided_slice %484 {offsets = [0, 96], sizes = [8, 32], strides = [1, 1]} : vector<8x128xf32> to vector<8x32xf32>
    %cst_155 = arith.constant 5.000000e-01 : f32
    %504 = vector.broadcast %cst_155 : f32 to vector<8x32xf32>
    %505 = arith.mulf %504, %503 : vector<8x32xf32>
    %506 = math.tanh %505 : vector<8x32xf32>
    %cst_156 = arith.constant 1.000000e+00 : f32
    %507 = vector.broadcast %cst_156 : f32 to vector<8x32xf32>
    %508 = arith.addf %506, %507 : vector<8x32xf32>
    %cst_157 = arith.constant 5.000000e-01 : f32
    %509 = vector.broadcast %cst_157 : f32 to vector<8x32xf32>
    %510 = arith.mulf %509, %508 : vector<8x32xf32>
    %511 = arith.mulf %500, %440 : vector<8x32xf32>
    %512 = arith.mulf %492, %502 : vector<8x32xf32>
    %513 = arith.addf %511, %512 : vector<8x32xf32>
    %514 = math.tanh %513 : vector<8x32xf32>
    %515 = arith.mulf %510, %514 : vector<8x32xf32>
    %516 = vector.extract_strided_slice %483 {offsets = [0, 128], sizes = [8, 128], strides = [1, 1]} : vector<8x256xf32> to vector<8x128xf32>
    %517 = vector.extract_strided_slice %516 {offsets = [0, 0], sizes = [8, 32], strides = [1, 1]} : vector<8x128xf32> to vector<8x32xf32>
    %cst_158 = arith.constant 5.000000e-01 : f32
    %518 = vector.broadcast %cst_158 : f32 to vector<8x32xf32>
    %519 = arith.mulf %518, %517 : vector<8x32xf32>
    %520 = math.tanh %519 : vector<8x32xf32>
    %cst_159 = arith.constant 1.000000e+00 : f32
    %521 = vector.broadcast %cst_159 : f32 to vector<8x32xf32>
    %522 = arith.addf %520, %521 : vector<8x32xf32>
    %cst_160 = arith.constant 5.000000e-01 : f32
    %523 = vector.broadcast %cst_160 : f32 to vector<8x32xf32>
    %524 = arith.mulf %523, %522 : vector<8x32xf32>
    %525 = vector.extract_strided_slice %516 {offsets = [0, 32], sizes = [8, 32], strides = [1, 1]} : vector<8x128xf32> to vector<8x32xf32>
    %cst_161 = arith.constant 5.000000e-01 : f32
    %526 = vector.broadcast %cst_161 : f32 to vector<8x32xf32>
    %527 = arith.mulf %526, %525 : vector<8x32xf32>
    %528 = math.tanh %527 : vector<8x32xf32>
    %cst_162 = arith.constant 1.000000e+00 : f32
    %529 = vector.broadcast %cst_162 : f32 to vector<8x32xf32>
    %530 = arith.addf %528, %529 : vector<8x32xf32>
    %cst_163 = arith.constant 5.000000e-01 : f32
    %531 = vector.broadcast %cst_163 : f32 to vector<8x32xf32>
    %532 = arith.mulf %531, %530 : vector<8x32xf32>
    %533 = vector.extract_strided_slice %516 {offsets = [0, 64], sizes = [8, 32], strides = [1, 1]} : vector<8x128xf32> to vector<8x32xf32>
    %534 = math.tanh %533 : vector<8x32xf32>
    %535 = vector.extract_strided_slice %516 {offsets = [0, 96], sizes = [8, 32], strides = [1, 1]} : vector<8x128xf32> to vector<8x32xf32>
    %cst_164 = arith.constant 5.000000e-01 : f32
    %536 = vector.broadcast %cst_164 : f32 to vector<8x32xf32>
    %537 = arith.mulf %536, %535 : vector<8x32xf32>
    %538 = math.tanh %537 : vector<8x32xf32>
    %cst_165 = arith.constant 1.000000e+00 : f32
    %539 = vector.broadcast %cst_165 : f32 to vector<8x32xf32>
    %540 = arith.addf %538, %539 : vector<8x32xf32>
    %cst_166 = arith.constant 5.000000e-01 : f32
    %541 = vector.broadcast %cst_166 : f32 to vector<8x32xf32>
    %542 = arith.mulf %541, %540 : vector<8x32xf32>
    %543 = arith.mulf %532, %472 : vector<8x32xf32>
    %544 = arith.mulf %524, %534 : vector<8x32xf32>
    %545 = arith.addf %543, %544 : vector<8x32xf32>
    %546 = math.tanh %545 : vector<8x32xf32>
    %547 = arith.mulf %542, %546 : vector<8x32xf32>
    %548 = tpu.concatenate %515, %547 in 1 : vector<8x32xf32>, vector<8x32xf32> -> vector<8x64xf32>
    %c384 = arith.constant 384 : index
    %c0_167 = arith.constant 0 : index
    %549 = vector.load %arg8[%c384, %c0_167] : memref<448x16xf32, #tpu.memory_space<vmem>>, vector<64x16xf32>
    %cst_168 = arith.constant dense<0.000000e+00> : vector<8x16xf32>
    %550 = tpu.matmul %548, %549, %cst_168 {dimension_numbers = #tpu.dot_dimension_numbers<[1], [0], [0], [1], [0, 0, 1, 1], [], []>} : vector<8x64xf32>, vector<64x16xf32>, vector<8x16xf32> -> vector<8x16xf32>
    %551 = arith.addf %478, %550 : vector<8x16xf32>
    %c0_169 = arith.constant 0 : index
    %c0_170 = arith.constant 0 : index
    %552 = vector.load %arg9[%c0_169, %c0_170] : memref<1x16xf32, #tpu.memory_space<vmem>>, vector<1x16xf32>
    %553 = vector.broadcast %552 : vector<1x16xf32> to vector<8x16xf32>
    %554 = arith.addf %551, %553 : vector<8x16xf32>
    %cst_171 = arith.constant 0.000000e+00 : f32
    %555 = vector.broadcast %cst_171 : f32 to vector<8x16xf32>
    %556 = arith.maximumf %554, %555 : vector<8x16xf32>
    %c0_172 = arith.constant 0 : index
    %c0_173 = arith.constant 0 : index
    %557 = vector.load %arg10[%c0_172, %c0_173] : memref<16x1xf32, #tpu.memory_space<vmem>>, vector<16x1xf32>
    %cst_174 = arith.constant dense<0.000000e+00> : vector<8x1xf32>
    %558 = tpu.matmul %556, %557, %cst_174 {dimension_numbers = #tpu.dot_dimension_numbers<[1], [0], [0], [1], [0, 0, 1, 1], [], []>} : vector<8x16xf32>, vector<16x1xf32>, vector<8x1xf32> -> vector<8x1xf32>
    %c0_175 = arith.constant 0 : index
    %c0_176 = arith.constant 0 : index
    %559 = vector.load %arg11[%c0_175, %c0_176] : memref<1x1xf32, #tpu.memory_space<vmem>>, vector<1x1xf32>
    %560 = vector.broadcast %559 : vector<1x1xf32> to vector<8x1xf32>
    %561 = arith.addf %558, %560 : vector<8x1xf32>
    %c0_177 = arith.constant 0 : index
    %c0_178 = arith.constant 0 : index
    %562 = vector.load %arg12[%c0_177, %c0_178] : memref<8x1xf32, #tpu.memory_space<vmem>>, vector<8x1xf32>
    tpu.vector_store %arg12[%c0_177, %c0_178], %561 {strides = array<i32>} : memref<8x1xf32, #tpu.memory_space<vmem>>, vector<8x1xf32>,
    return
  }
}

</mosaic_0001>

<bundles_post_ra>
// kernel: mitar_forward.1
= control target key start
LH: loop header
LB: loop body
LE: loop exit
PB: predicated region body
PF: predicated region fallthrough
CT: control target
= control target key end

     0   :  { %s3556_s0 = inlined_call_operand.vmem [shape: bf16[8,130], index: 0, kind: input, shape index: {}]   ;;  %s3557_s1 = inlined_call_operand.vmem [shape: bf16[130,130], index: 1, kind: input, shape index: {}]   ;;  %s3558_s2 = inlined_call_operand.vmem [shape: f32[1,130], index: 2, kind: input, shape index: {}]   ;;  %s3559_s3 = inlined_call_operand.vmem [shape: bf16[60,320], index: 3, kind: input, shape index: {}]   ;;  %s3560_s4 = inlined_call_operand.vmem [shape: f32[1,320], index: 4, kind: input, shape index: {}]   ;;  %s3561_s5 = inlined_call_operand.vmem [shape: bf16[320,256], index: 5, kind: input, shape index: {}]   ;;  %s3562_s6 = inlined_call_operand.vmem [shape: f32[1,256], index: 6, kind: input, shape index: {}]   ;;  %s3563_s7 = inlined_call_operand.hbm [shape: f32[64,256], index: 7, kind: input, shape index: {}]   ;;  %s3564_s8 = inlined_call_operand.vmem [shape: f32[448,16], index: 8, kind: input, shape index: {}]   ;;  %s3565_s9 = inlined_call_operand.vmem [shape: f32[1,16], index: 9, kind: input, shape index: {}]   ;;  %s3566_s10 = inlined_call_operand.vmem [shape: f32[16,1], index: 10, kind: input, shape index: {}]   ;;  %s3567_s11 = inlined_call_operand.<no memory space> [shape: f32[1,1], index: 11, kind: input, shape index: {}]   ;;  %s3568_s12 = inlined_call_operand.vmem [shape: f32[8,1], index: 12, kind: output, shape index: {}]  }
   0x1   :  { %v17_v0 = vstv %s3567_s11 }
   0x2   :  { %18 = vst [vmem:[#allocation2] sm:$0x1] %v17_v0 }
   0x3   :  { %19 = vsyncpa [#allocation4], 0  ;;  %s38_s25 = sshll.u32 %s3563_s7, 4  ;;  %s2389_s26 = smov [#allocation3]   ;;  %s39_s25 = int_to_ptr.hbm [resolvable:$true] %s38_s25 }
   0x4   :  { %s40_s27 = sshll.u32 %s2389_s26, 4  ;;  %s2390_s28 = smov 256   ;;  %s41_s27 = int_to_ptr.vmem [resolvable:$true] %s40_s27 }
   0x5   :  { %s2391_s29 = smov 16  }
   0x6   :  { %46 = dma.hbm_to_vmem [thread:$0]  %s39_s25, 2048, %s41_s27, [#allocation4], %s2390_s28, %s2390_s28, %s2391_s29  }
   0x7   :  { %2387 = dma.done.wait [#allocation4], 2048  }
   0x8   :  { %2388 = vsyncadd [#allocation4], 4294965248  ;;  %v1930_v1 = vld [vmem:[%s3557_s1 + $0x70] sm:$0xf]  ;;  %v2197_v2 = vld [vmem:[%s3557_s1 + $0x74] sm:$0xf0] }
   0x9   :  { %v1926_v3 = vld [vmem:[%s3557_s1 + $0x60] sm:$0xf]  ;;  %v1931_v4 = vor.u32 %v2197_v2, %v1930_v1  ;;  %v2196_v5 = vld [vmem:[%s3557_s1 + $0x64] sm:$0xf0]  ;;  %v1922_v7 = vld [vmem:[%s3557_s1 + $0x50] sm:$0xf] }
   0xa   :  { %v1927_v6 = vor.u32 %v2196_v5, %v1926_v3  ;;  %v2195_v8 = vld [vmem:[%s3557_s1 + $0x54] sm:$0xf0]  ;;  %v77_v9 = vld [vmem:[%s3557_s1 + $0x80] sm:$0x1]  ;;  %vm143_vm0 = vcmask 1040384   ;;  %vm139_vm1 = vcmask 15360  }
   0xb   :  { %147 = vmatpush.bf16.msra.mxu0 %v1931_v4  ;;  %v121_v10 = vunpack.c.l.b16 %v77_v9  ;;  %v60_v11 = vld [vmem:[%s3556_s0] sm:$0xff]  ;;  %v1923_v13 = vor.u32 %v2195_v8, %v1922_v7  ;;  %v2194_v16 = vld [vmem:[%s3557_s1 + $0x44] sm:$0xf0]  ;;  %v1914_v20 = vld [vmem:[%s3557_s1 + $0x30] sm:$0xf]  ;;  %s2392_s27 = smov 78  }
   0xc   :  { %v84_v12 = vunpack.c.h.b16 %v60_v11  ;;  %v1918_v15 = vld [vmem:[%s3557_s1 + $0x40] sm:$0xf]  ;;  %v2193_v21 = vld [vmem:[%s3557_s1 + $0x34] sm:$0xf0]  ;;  %v2192_v24 = vld [vmem:[%s3557_s1 + $0x24] sm:$0xf0]  ;;  %v83_v31 = vunpack.c.l.b16 %v60_v11 }
   0xd   :  { %v130_v14 = vpack.c.b16 %v121_v10, %v121_v10  ;;  %v1919_v19 = vor.u32 %v2194_v16, %v1918_v15  ;;  %v1915_v22 = vor.u32 %v2193_v21, %v1914_v20  ;;  %v1910_v23 = vld [vmem:[%s3557_s1 + $0x20] sm:$0xf]  ;;  %v1906_v26 = vld [vmem:[%s3557_s1 + $0x10] sm:$0xf]  ;;  %v2191_v27 = vld [vmem:[%s3557_s1 + $0x14] sm:$0xf0] }
   0xe   :  { %v86_v18 = vpack.c.b16 %v84_v12, %v84_v12  ;;  %v1911_v25 = vor.u32 %v2192_v24, %v1910_v23  ;;  %v1907_v28 = vor.u32 %v2191_v27, %v1906_v26  ;;  %v1902_v29 = vld [vmem:[%s3557_s1] sm:$0xf]  ;;  %v2190_v30 = vld [vmem:[%s3557_s1 + $0x4] sm:$0xf0]  ;;  %v85_v33 = vpack.c.b16 %v83_v31, %v83_v31  ;;  %s2393_s1 = smov 98   ;;  %s2394_s28 = smov 118  }
   0xf   :  { %148 = vmatpush.bf16.msra.mxu0 %v1927_v6  ;;  %v145_v17 = vsel %vm143_vm0, %v130_v14, 0  ;;  %v1903_v32 = vor.u32 %v2190_v30, %v1902_v29  ;;  %v78_v36 = vld [vmem:[%s3558_s2] sm:$0x3]  ;;  %s2395_s29 = smov 68   ;;  %s2396_s0 = smov 88   ;;  %vm319_vm2 = vcmask 1045504  }
  0x10   :  { %167 = vmatpush.bf16.msra.mxu1 %v145_v17  ;;  %v80_v37 = vperm.slane %v78_v36, 0  ;;  %s2397_s2 = smov 108   ;;  %s2398_s30 = smov 103   ;;  %v1971_v42 = vld [vmem:[%s3559_s3 + $0x48] sm:$0xf]  ;;  %vm297_vm3 = vcmask 490496  }
  0x11   :  { %s2399_s13 = smov 113   ;;  %s2400_s11 = smov 123   ;;  %v2208_v43 = vld [vmem:[%s3559_s3 + $0x50] sm:$0x30]  ;;  %v2207_v45 = vld [vmem:[%s3559_s3 + $0x4c] sm:$0xf] }
  0x12   :  { %s2401_s14 = smov 73   ;;  %s2402_s15 = smov 83   ;;  %v1972_v44 = vor.u32 %v2208_v43, %v1971_v42  ;;  %v1973_v46 = vld [vmem:[%s3559_s3 + $0x54] sm:$0x30]  ;;  %v1979_v47 = vld [vmem:[%s3559_s3 + $0x50] sm:$0xf] }
  0x13   :  { %149 = vmatpush.bf16.msra.mxu0 %v1923_v13  ;;  %1932 = vmatmul.msk.bf16.vlgmr.msra.gmra.mxu1 %vm139_vm1, %v86_v18  ;;  %s2403_s16 = smov 93   ;;  %s2404_s7 = smov 63   ;;  %v1976_v48 = vor.u32 %v2207_v45, %v1973_v46  ;;  %v2209_v49 = vld [vmem:[%s3559_s3 + $0x58] sm:$0x30]  ;;  %v1959_v50 = vld [vmem:[%s3559_s3 + $0x30] sm:$0xf] }
  0x14   :  { %v2205_v51 = vld [vmem:[%s3559_s3 + $0x38] sm:$0xf0]  ;;  %v321_v52 = vsel %vm319_vm2, %v1972_v44, 0  ;;  %v1980_v53 = vor.u32 %v2209_v49, %v1979_v47  ;;  %v2204_v54 = vld [vmem:[%s3559_s3 + $0x34] sm:$0xf]  ;;  %vm769_vm4 = vcmask 523264  }
  0x15   :  { %v1961_v55 = vld [vmem:[%s3559_s3 + $0x3c] sm:$0xf0]  ;;  %333 = vmatpush.bf16.msra.mxu2 %v321_v52  ;;  %v324_v56 = vsel %vm319_vm2, %v1976_v48, 0  ;;  %v1960_v57 = vor.u32 %v2205_v51, %v1959_v50  ;;  %v1967_v58 = vld [vmem:[%s3559_s3 + $0x38] sm:$0xf]  ;;  %vm1063_vm5 = vcmask 261120  }
  0x16   :  { %v2206_v59 = vld [vmem:[%s3559_s3 + $0x40] sm:$0xf0]  ;;  %377 = vmatpush.bf16.msra.mxu3 %v324_v56  ;;  %v327_v60 = vsel %vm319_vm2, %v1980_v53, 0  ;;  %v1964_v61 = vor.u32 %v2204_v54, %v1961_v55  ;;  %v1947_v63 = vld [vmem:[%s3559_s3 + $0x18] sm:$0xf]  ;;  %vm1869_vm6 = vcmask 130048  }
  0x17   :  { %150 = vmatpush.bf16.msra.mxu0 %v1919_v19  ;;  %421 = vmatpush.bf16.msrb.mxu1 %v327_v60  ;;  %v1968_v62 = vor.u32 %v2206_v59, %v1967_v58  ;;  %v2202_v0 = vld [vmem:[%s3559_s3 + $0x20] sm:$0xf0]  ;;  %v2201_v1 = vld [vmem:[%s3559_s3 + $0x1c] sm:$0xf]  ;;  %v1949_v3 = vld [vmem:[%s3559_s3 + $0x24] sm:$0xf0] }
  0x18   :  { %v1948_v2 = vor.u32 %v2202_v0, %v1947_v63  ;;  %v1955_v4 = vld [vmem:[%s3559_s3 + $0x20] sm:$0xf]  ;;  %v2203_v5 = vld [vmem:[%s3559_s3 + $0x28] sm:$0xf0]  ;;  %v1952_v6 = vor.u32 %v2201_v1, %v1949_v3  ;;  %v2198_v10 = vld [vmem:[%s3559_s3 + $0x4] sm:$0xf] }
  0x19   :  { %334 = vmatpush.bf16.msra.mxu2 %v1960_v57  ;;  %v1956_v7 = vor.u32 %v2203_v5, %v1955_v4  ;;  %v1935_v8 = vld [vmem:[%s3559_s3] sm:$0xf]  ;;  %v2199_v9 = vld [vmem:[%s3559_s3 + $0x8] sm:$0xf0]  ;;  %v1937_v11 = vld [vmem:[%s3559_s3 + $0xc] sm:$0xf0] }
  0x1a   :  { %378 = vmatpush.bf16.msra.mxu3 %v1964_v61  ;;  %v1943_v12 = vld [vmem:[%s3559_s3 + $0x8] sm:$0xf]  ;;  %v2200_v13 = vld [vmem:[%s3559_s3 + $0x10] sm:$0xf0]  ;;  %v1936_v14 = vor.u32 %v2199_v9, %v1935_v8  ;;  %v1940_v15 = vor.u32 %v2198_v10, %v1937_v11  ;;  %v2225_v42 = vld [vmem:[%s3561_s5 + $0x74] sm:$0xf0] }
  0x1b   :  { %151 = vmatpush.bf16.msra.mxu0 %v1915_v22  ;;  %422 = vmatpush.bf16.msrb.mxu1 %v1968_v62  ;;  %v1944_v16 = vor.u32 %v2200_v13, %v1943_v12  ;;  %v2224_v43 = vld [vmem:[%s3561_s5 + $0x74] sm:$0xf]  ;;  %v2062_v45 = vld [vmem:[%s3561_s5 + $0x78] sm:$0xf0]  ;;  %v2052_v52 = vld [vmem:[%s3561_s5 + $0x60] sm:$0xf] }
  0x1c   :  { %v2240_v46 = vld [vmem:[%s3561_s5 + $0xf4] sm:$0xf]  ;;  %v2126_v47 = vld [vmem:[%s3561_s5 + $0xf8] sm:$0xf0]  ;;  %v2065_v50 = vor.u32 %v2224_v43, %v2062_v45  ;;  %v2223_v53 = vld [vmem:[%s3561_s5 + $0x64] sm:$0xf0] }
  0x1d   :  { %335 = vmatpush.bf16.msra.mxu2 %v1948_v2  ;;  %v2129_v51 = vor.u32 %v2240_v46, %v2126_v47  ;;  %v2222_v54 = vld [vmem:[%s3561_s5 + $0x64] sm:$0xf]  ;;  %v2156_v56 = vld [vmem:[%s3561_s5 + $0x130] sm:$0xf]  ;;  %v2249_v57 = vld [vmem:[%s3561_s5 + $0x134] sm:$0xf0]  ;;  %v2053_v58 = vor.u32 %v2223_v53, %v2052_v52 }
  0x1e   :  { %379 = vmatpush.bf16.msra.mxu3 %v1952_v6  ;;  %v2054_v59 = vld [vmem:[%s3561_s5 + $0x68] sm:$0xf0]  ;;  %v2157_v60 = vor.u32 %v2249_v57, %v2156_v56  ;;  %v2238_v62 = vld [vmem:[%s3561_s5 + $0xe4] sm:$0xf]  ;;  %v2044_v1 = vld [vmem:[%s3561_s5 + $0x50] sm:$0xf] }
  0x1f   :  { %152 = vmatpush.bf16.msra.mxu0 %v1911_v25  ;;  %423 = vmatpush.bf16.msrb.mxu1 %v1956_v7  ;;  %v2057_v61 = vor.u32 %v2222_v54, %v2054_v59  ;;  %v2118_v63 = vld [vmem:[%s3561_s5 + $0xe8] sm:$0xf0]  ;;  %v2221_v2 = vld [vmem:[%s3561_s5 + $0x54] sm:$0xf0]  ;;  %v2220_v3 = vld [vmem:[%s3561_s5 + $0x54] sm:$0xf] }
  0x20   :  { %v2121_v0 = vor.u32 %v2238_v62, %v2118_v63  ;;  %v2045_v4 = vor.u32 %v2221_v2, %v2044_v1  ;;  %v2046_v5 = vld [vmem:[%s3561_s5 + $0x58] sm:$0xf0]  ;;  %v2236_v6 = vld [vmem:[%s3561_s5 + $0xd4] sm:$0xf]  ;;  %v2036_v12 = vld [vmem:[%s3561_s5 + $0x40] sm:$0xf] }
  0x21   :  { %336 = vmatpush.bf16.msra.mxu2 %v1936_v14  ;;  %v2110_v7 = vld [vmem:[%s3561_s5 + $0xd8] sm:$0xf0]  ;;  %v2049_v10 = vor.u32 %v2220_v3, %v2046_v5  ;;  %v2219_v13 = vld [vmem:[%s3561_s5 + $0x44] sm:$0xf0]  ;;  %v2218_v14 = vld [vmem:[%s3561_s5 + $0x44] sm:$0xf] }
  0x22   :  { %380 = vmatpush.bf16.msra.mxu3 %v1940_v15  ;;  %v2113_v11 = vor.u32 %v2236_v6, %v2110_v7  ;;  %v2020_v43 = vld [vmem:[%s3561_s5 + $0x20] sm:$0xf]  ;;  %v2214_v47 = vld [vmem:[%s3561_s5 + $0x24] sm:$0xf]  ;;  %v2086_v53 = vld [vmem:[%s3561_s5 + $0xa8] sm:$0xf0] }
  0x23   :  { %153 = vmatpush.bf16.msra.mxu0 %v1907_v28  ;;  %424 = vmatpush.bf16.msrb.mxu1 %v1944_v16  ;;  %v2037_v16 = vor.u32 %v2219_v13, %v2036_v12  ;;  %v2132_v54 = vld [vmem:[%s3561_s5 + $0x100] sm:$0xf]  ;;  %v2243_v56 = vld [vmem:[%s3561_s5 + $0x104] sm:$0xf0]  ;;  %v2012_v59 = vld [vmem:[%s3561_s5 + $0x10] sm:$0xf] }
  0x24   :  { %v2014_v63 = vld [vmem:[%s3561_s5 + $0x18] sm:$0xf0]  ;;  %v2004_v6 = vld [vmem:[%s3561_s5] sm:$0xf]  ;;  %v2211_v7 = vld [vmem:[%s3561_s5 + $0x4] sm:$0xf0] }
  0x25   :  { %842 = vmatpush.bf16.msrb.mxu2 %v2157_v60  ;;  %v2213_v60 = vld [vmem:[%s3561_s5 + $0x14] sm:$0xf0]  ;;  %v2078_v1 = vld [vmem:[%s3561_s5 + $0x98] sm:$0xf0]  ;;  %v2005_v12 = vor.u32 %v2211_v7, %v2004_v6  ;;  %v2006_v13 = vld [vmem:[%s3561_s5 + $0x8] sm:$0xf0] }
  0x26   :  { %866 = vmatpush.bf16.msrb.mxu3 %v2065_v50  ;;  %v2022_v50 = vld [vmem:[%s3561_s5 + $0x28] sm:$0xf0]  ;;  %v2013_v62 = vor.u32 %v2213_v60, %v2012_v59  ;;  %v2092_v6 = vld [vmem:[%s3561_s5 + $0xb0] sm:$0xf]  ;;  %v2233_v7 = vld [vmem:[%s3561_s5 + $0xb4] sm:$0xf0] }
  0x27   :  { %154 = vmatpush.bf16.msra.mxu0 %v1903_v32  ;;  %894 = vmatpush.bf16.msra.mxu1 %v2129_v51  ;;  %v2230_v51 = vld [vmem:[%s3561_s5 + $0xa4] sm:$0xf]  ;;  %v2025_v52 = vor.u32 %v2214_v47, %v2022_v50  ;;  %vm1893_vm7 = vcmask 7168  }
  0x28   :  { %v2089_v57 = vor.u32 %v2230_v51, %v2086_v53 }
  0x2a   :  { %155 = vmatmul.bf16.vlgmr.msra.gmra.mxu0 %v85_v33  ;;  %867 = vmatpush.bf16.msrb.mxu3 %v2057_v61  ;;  %v2212_v61 = vld [vmem:[%s3561_s5 + $0x14] sm:$0xf] }
  0x2b   :  { %895 = vmatpush.bf16.msra.mxu1 %v2121_v0  ;;  %v2228_v0 = vld [vmem:[%s3561_s5 + $0x94] sm:$0xf] }
  0x2c   :  { %v2081_v5 = vor.u32 %v2228_v0, %v2078_v1 }
  0x2e   :  { %868 = vmatpush.bf16.msrb.mxu3 %v2049_v10  ;;  %v2210_v10 = vld [vmem:[%s3561_s5 + $0x4] sm:$0xf] }
  0x2f   :  { %896 = vmatpush.bf16.msra.mxu1 %v2113_v11 }
  0x90   :  { %v169_v34 = vpop.f32.mrf.mxu1 }
  0x98   :  { %v171_v35 = vpop.f32.mrf.mxu1 }
  0xa7   :  { %v156_v38 = vpop.f32.mrf.mxu0 }
  0xa8   :  { %v157_v39 = vadd.f32 %v156_v38, %v80_v37 }
  0xaa   :  { %v2536_v40 = vadd.f32 %v169_v34, %v157_v39 }
  0xac   :  { %186 = vrot.lane.b32.xlu2 %v2536_v40, %s2392_s27  ;;  %180 = vrot.lane.b32.xlu1 %v2536_v40, %s2393_s1 }
  0xad   :  { %174 = vrot.lane.b32.xlu0 %v2536_v40, %s2394_s28 }
  0xaf   :  { %v158_v41 = vpop.f32.mrf.mxu0 }
  0xb0   :  { %v2060_v41 = vld [vmem:[%s3561_s5 + $0x70] sm:$0xf] }
  0xb1   :  { %v2061_v44 = vor.u32 %v2225_v42, %v2060_v41  ;;  %v2245_v41 = vld [vmem:[%s3561_s5 + $0x114] sm:$0xf0] }
  0xb3   :  { %782 = vmatpush.bf16.msrb.mxu0 %v2061_v44  ;;  %v2215_v44 = vld [vmem:[%s3561_s5 + $0x24] sm:$0xf0] }
  0xb4   :  { %189 = vrot.lane.b32.xlu2 %v2536_v40, %s2395_s29  ;;  %183 = vrot.lane.b32.xlu1 %v2536_v40, %s2396_s0  ;;  %v2021_v46 = vor.u32 %v2215_v44, %v2020_v43 }
  0xb5   :  { %177 = vrot.lane.b32.xlu0 %v2536_v40, %s2397_s2 }
  0xb7   :  { %783 = vmatpush.bf16.msrb.mxu0 %v2053_v58  ;;  %v2133_v58 = vor.u32 %v2243_v56, %v2132_v54  ;;  %v2100_v54 = vld [vmem:[%s3561_s5 + $0xc0] sm:$0xf] }
  0xbb   :  { %784 = vmatpush.bf16.msrb.mxu0 %v2045_v4  ;;  %v2017_v4 = vor.u32 %v2212_v61, %v2014_v63 }
  0xbc   :  { %198 = vrot.lane.b32.xlu2 %v2536_v40, %s2398_s30  ;;  %195 = vrot.lane.b32.xlu1 %v2536_v40, %s2399_s13 }
  0xbd   :  { %192 = vrot.lane.b32.xlu0 %v2536_v40, %s2400_s11  ;;  %s2407_s11 = smov 32  }
  0xbf   :  { %785 = vmatpush.bf16.msrb.mxu0 %v2037_v16  ;;  %v2070_v16 = vld [vmem:[%s3561_s5 + $0x88] sm:$0xf0] }
  0xc4   :  { %207 = vrot.lane.b32.xlu2 %v2536_v40, %s2401_s14  ;;  %204 = vrot.lane.b32.xlu1 %v2536_v40, %s2402_s15 }
  0xc5   :  { %201 = vrot.lane.b32.xlu0 %v2536_v40, %s2403_s16 }
  0xcd   :  { %210 = vrot.lane.b32.xlu0 %v2536_v40, %s2404_s7 }
 0x106   :  { %v187_v23 = vpop.permute.xlu2 %186 }
 0x10e   :  { %v190_v26 = vpop.permute.xlu2 %189 }
 0x116   :  { %v199_v29 = vpop.permute.xlu2 %198 }
 0x11e   :  { %v181_v20 = vpop.permute.xlu1 %180  ;;  %v208_v35 = vpop.permute.xlu2 %207 }
 0x11f   :  { %v175_v17 = vpop.permute.xlu0 %174 }
 0x120   :  { %v213_v18 = vpack.c.bf16 %v175_v17, %v2536_v40  ;;  %v2038_v17 = vld [vmem:[%s3561_s5 + $0x48] sm:$0xf0] }
 0x122   :  { %1981 = vmatmul.msk.bf16.vlgmr.msra.gmra.mxu2 %vm297_vm3, %v213_v18  ;;  %1988 = vmatmul.msk.bf16.vlgmr.msra.gmra.mxu3 %vm297_vm3, %v213_v18 }
 0x123   :  { %1995 = vmatmul.msk.bf16.vlgmr.msrb.gmra.mxu1 %vm297_vm3, %v213_v18  ;;  %v2234_v18 = vld [vmem:[%s3561_s5 + $0xc4] sm:$0xf] }
 0x126   :  { %v184_v22 = vpop.permute.xlu1 %183 }
 0x127   :  { %v178_v19 = vpop.permute.xlu0 %177  ;;  %v215_v24 = vpack.c.bf16 %v187_v23, %v184_v22  ;;  %v2247_v23 = vld [vmem:[%s3561_s5 + $0x124] sm:$0xf0] }
 0x128   :  { %v214_v21 = vpack.c.bf16 %v181_v20, %v178_v19  ;;  %v2041_v19 = vor.u32 %v2218_v14, %v2038_v17  ;;  %v2102_v20 = vld [vmem:[%s3561_s5 + $0xc8] sm:$0xf0]  ;;  %v2226_v14 = vld [vmem:[%s3561_s5 + $0x84] sm:$0xf]  ;;  %v2009_v17 = vor.u32 %v2210_v10, %v2006_v13  ;;  %v2093_v10 = vor.u32 %v2233_v7, %v2092_v6  ;;  %v2231_v13 = vld [vmem:[%s3561_s5 + $0xa4] sm:$0xf0] }
 0x129   :  { %v2105_v22 = vor.u32 %v2234_v18, %v2102_v20  ;;  %v2073_v18 = vor.u32 %v2226_v14, %v2070_v16  ;;  %v2241_v20 = vld [vmem:[%s3561_s5 + $0xf4] sm:$0xf0] }
 0x12a   :  { %869 = vmatpush.bf16.msrb.mxu3 %v2041_v19  ;;  %v2124_v19 = vld [vmem:[%s3561_s5 + $0xf0] sm:$0xf] }
 0x12b   :  { %897 = vmatpush.bf16.msra.mxu1 %v2105_v22 }
 0x12e   :  { %v196_v28 = vpop.permute.xlu1 %195 }
 0x12f   :  { %v193_v25 = vpop.permute.xlu0 %192  ;;  %v217_v30 = vpack.c.bf16 %v199_v29, %v196_v28  ;;  %v2030_v29 = vld [vmem:[%s3561_s5 + $0x38] sm:$0xf0] }
 0x130   :  { %v216_v27 = vpack.c.bf16 %v193_v25, %v190_v26  ;;  %v2028_v25 = vld [vmem:[%s3561_s5 + $0x30] sm:$0xf]  ;;  %v2217_v26 = vld [vmem:[%s3561_s5 + $0x34] sm:$0xf0] }
 0x131   :  { %v2029_v28 = vor.u32 %v2217_v26, %v2028_v25  ;;  %v2116_v25 = vld [vmem:[%s3561_s5 + $0xe0] sm:$0xf]  ;;  %v2239_v26 = vld [vmem:[%s3561_s5 + $0xe4] sm:$0xf0] }
 0x132   :  { %1982 = vmatmul.msk.bf16.gmra.mxu2 %vm297_vm3, %v214_v21  ;;  %1989 = vmatmul.msk.bf16.gmra.mxu3 %vm297_vm3, %v214_v21 }
 0x133   :  { %1996 = vmatmul.msk.bf16.gmra.mxu1 %vm297_vm3, %v214_v21  ;;  %v2148_v21 = vld [vmem:[%s3561_s5 + $0x120] sm:$0xf]  ;;  %786 = vmatpush.bf16.msrb.mxu0 %v2029_v28 }
 0x136   :  { %v205_v31 = vpop.permute.xlu1 %204 }
 0x137   :  { %v202_v32 = vpop.permute.xlu0 %201  ;;  %787 = vmatpush.bf16.msrb.mxu0 %v2021_v46 }
 0x138   :  { %v218_v33 = vpack.c.bf16 %v205_v31, %v202_v32  ;;  %v2094_v31 = vld [vmem:[%s3561_s5 + $0xb8] sm:$0xf0] }
 0x13b   :  { %788 = vmatpush.bf16.msrb.mxu0 %v2013_v62 }
 0x13f   :  { %v211_v34 = vpop.permute.xlu0 %210  ;;  %789 = vmatpush.bf16.msrb.mxu0 %v2005_v12  ;;  %v2084_v12 = vld [vmem:[%s3561_s5 + $0xa0] sm:$0xf] }
 0x140   :  { %v219_v36 = vpack.c.bf16 %v211_v34, %v208_v35 }
 0x142   :  { %1983 = vmatmul.msk.bf16.gmra.mxu2 %vm297_vm3, %v215_v24  ;;  %1990 = vmatmul.msk.bf16.gmra.mxu3 %vm297_vm3, %v215_v24 }
 0x143   :  { %1997 = vmatmul.msk.bf16.gmra.mxu1 %vm297_vm3, %v215_v24  ;;  %v2149_v24 = vor.u32 %v2247_v23, %v2148_v21  ;;  %v2125_v23 = vor.u32 %v2241_v20, %v2124_v19 }
 0x145   :  { %843 = vmatpush.bf16.msrb.mxu2 %v2149_v24  ;;  %810 = vmatpush.bf16.msra.mxu0 %v2125_v23 }
 0x152   :  { %1984 = vmatmul.msk.bf16.gmra.mxu2 %vm297_vm3, %v216_v27  ;;  %1991 = vmatmul.msk.bf16.gmra.mxu3 %vm297_vm3, %v216_v27 }
 0x153   :  { %1998 = vmatmul.msk.bf16.gmra.mxu1 %vm297_vm3, %v216_v27  ;;  %v2216_v27 = vld [vmem:[%s3561_s5 + $0x34] sm:$0xf] }
 0x154   :  { %v2033_v34 = vor.u32 %v2216_v27, %v2030_v29  ;;  %v2117_v27 = vor.u32 %v2239_v26, %v2116_v25 }
 0x156   :  { %870 = vmatpush.bf16.msrb.mxu3 %v2033_v34  ;;  %811 = vmatpush.bf16.msra.mxu0 %v2117_v27  ;;  %v2108_v34 = vld [vmem:[%s3561_s5 + $0xd0] sm:$0xf] }
 0x15a   :  { %871 = vmatpush.bf16.msrb.mxu3 %v2025_v52 }
 0x15e   :  { %872 = vmatpush.bf16.msrb.mxu3 %v2017_v4 }
 0x162   :  { %1985 = vmatmul.msk.bf16.gmra.mxu2 %vm297_vm3, %v217_v30  ;;  %1992 = vmatmul.msk.bf16.gmra.mxu3 %vm297_vm3, %v217_v30 }
 0x163   :  { %1999 = vmatmul.msk.bf16.gmra.mxu1 %vm297_vm3, %v217_v30  ;;  %v2232_v30 = vld [vmem:[%s3561_s5 + $0xb4] sm:$0xf]  ;;  %873 = vmatpush.bf16.msrb.mxu3 %v2009_v17  ;;  %v2085_v17 = vor.u32 %v2231_v13, %v2084_v12 }
 0x164   :  { %v2097_v35 = vor.u32 %v2232_v30, %v2094_v31  ;;  %v482_v31 = vld [vmem:[%s3560_s4] sm:$0x7]  ;;  %v2248_v13 = vld [vmem:[%s3561_s5 + $0x134] sm:$0xf] }
 0x165   :  { %v2880_v44 = vperm.slane %v482_v31, 2  ;;  %v2884_v51 = vperm.slane %v482_v31, 0  ;;  %v2886_v52 = vperm.slane %v482_v31, 1 }
 0x166   :  { %898 = vmatpush.bf16.msra.mxu1 %v2097_v35  ;;  %v2237_v35 = vld [vmem:[%s3561_s5 + $0xd4] sm:$0xf0] }
 0x16a   :  { %899 = vmatpush.bf16.msra.mxu1 %v2089_v57 }
 0x16e   :  { %900 = vmatpush.bf16.msra.mxu1 %v2081_v5 }
 0x172   :  { %1986 = vmatmul.msk.bf16.gmra.mxu2 %vm297_vm3, %v218_v33  ;;  %1993 = vmatmul.msk.bf16.gmra.mxu3 %vm297_vm3, %v218_v33 }
 0x173   :  { %2000 = vmatmul.msk.bf16.gmra.mxu1 %vm297_vm3, %v218_v33 }
 0x174   :  { %901 = vmatpush.bf16.msra.mxu1 %v2073_v18 }
 0x182   :  { %1987 = vmatmul.msk.bf16.gmra.mxu2 %vm297_vm3, %v219_v36  ;;  %1994 = vmatmul.msk.bf16.gmra.mxu3 %vm297_vm3, %v219_v36 }
 0x183   :  { %2001 = vmatmul.msk.bf16.gmra.mxu1 %vm297_vm3, %v219_v36  ;;  %v2140_v36 = vld [vmem:[%s3561_s5 + $0x110] sm:$0xf] }
 0x184   :  { %v2141_v42 = vor.u32 %v2245_v41, %v2140_v36 }
 0x186   :  { %844 = vmatpush.bf16.msrb.mxu2 %v2141_v42  ;;  %v2109_v42 = vor.u32 %v2237_v35, %v2108_v34 }
 0x188   :  { %812 = vmatpush.bf16.msra.mxu0 %v2109_v42  ;;  %v2229_v42 = vld [vmem:[%s3561_s5 + $0x94] sm:$0xf0] }
 0x18a   :  { %845 = vmatpush.bf16.msrb.mxu2 %v2133_v58 }
 0x1a0   :  { %v2648_v37 = vpop.f32.mrf.mxu1 }
 0x1a5   :  { %v2650_v38 = vpop.f32.mrf.mxu2  ;;  %v2652_v39 = vpop.f32.mrf.mxu3 }
 0x1a8   :  { %v2654_v40 = vpop.f32.mrf.mxu1 }
 0x1ad   :  { %v2674_v48 = vpop.f32.mrf.mxu2  ;;  %v2676_v49 = vpop.f32.mrf.mxu3 }
 0x1b0   :  { %v2687_v55 = vpop.f32.mrf.mxu1 }
 0x1b5   :  { %v2722_v8 = vpop.f32.mrf.mxu2  ;;  %v2724_v9 = vpop.f32.mrf.mxu3 }
 0x1b8   :  { %v2735_v15 = vpop.f32.mrf.mxu1 }
 0x1bd   :  { %v2770_v32 = vpop.f32.mrf.mxu2  ;;  %v2772_v33 = vpop.f32.mrf.mxu3 }
 0x1c0   :  { %v2786_v45 = vpop.f32.mrf.mxu1 }
 0x1c5   :  { %v2824_v2 = vpop.f32.mrf.mxu2  ;;  %v2826_v3 = vpop.f32.mrf.mxu3 }
 0x1c8   :  { %v2837_v11 = vpop.f32.mrf.mxu1 }
 0x1cd   :  { %v2854_v21 = vpop.f32.mrf.mxu2  ;;  %v2856_v22 = vpop.f32.mrf.mxu3 }
 0x1d0   :  { %v2858_v24 = vpop.f32.mrf.mxu1 }
 0x1d5   :  { %v2866_v28 = vpop.f32.mrf.mxu2  ;;  %v2868_v29 = vpop.f32.mrf.mxu3 }
 0x1d8   :  { %v443_v30 = vpop.f32.mrf.mxu1 }
 0x1d9   :  { %v463_v43 = vmax.f32 %v2648_v37, %v443_v30  ;;  %v2235_v37 = vld [vmem:[%s3561_s5 + $0xc4] sm:$0xf0] }
 0x1da   :  { %v2101_v57 = vor.u32 %v2235_v37, %v2100_v54  ;;  %v2068_v54 = vld [vmem:[%s3561_s5 + $0x80] sm:$0xf]  ;;  %v2227_v37 = vld [vmem:[%s3561_s5 + $0x84] sm:$0xf0] }
 0x1db   :  { %v492_v50 = vadd.f32 %v2880_v44, %v463_v43 }
 0x1dc   :  { %813 = vmatpush.bf16.msra.mxu0 %v2101_v57  ;;  %v2069_v57 = vor.u32 %v2227_v37, %v2068_v54 }
 0x1dd   :  { %v355_v36 = vpop.f32.mrf.mxu2  ;;  %v399_v41 = vpop.f32.mrf.mxu3 }
 0x1de   :  { %v461_v56 = vmax.f32 %v2650_v38, %v355_v36 }
 0x1e0   :  { %v446_v46 = vpop.f32.mrf.mxu1  ;;  %v490_v63 = vadd.f32 %v2884_v51, %v461_v56  ;;  %814 = vmatpush.bf16.msra.mxu0 %v2093_v10 }
 0x1e1   :  { %v466_v47 = vmax.f32 %v2654_v40, %v446_v46  ;;  %v462_v40 = vmax.f32 %v2652_v39, %v399_v41  ;;  %v2076_v41 = vld [vmem:[%s3561_s5 + $0x90] sm:$0xf] }
 0x1e3   :  { %v495_v53 = vadd.f32 %v2880_v44, %v466_v47  ;;  %v491_v38 = vadd.f32 %v2886_v52, %v462_v40  ;;  %v2077_v47 = vor.u32 %v2229_v42, %v2076_v41  ;;  %v2964_v40 = vld [vmem:[#allocation3 + $0x40] sm:$0xff]  ;;  %v3044_v41 = vld [vmem:[#allocation3 + $0x58] sm:$0xff] }
 0x1e4   :  { %815 = vmatpush.bf16.msra.mxu0 %v2085_v17  ;;  %v3061_v42 = vld [vmem:[#allocation3 + $0x38] sm:$0xff] }
 0x1e5   :  { %v2897_v58 = vpack.c.bf16 %v495_v53, %v492_v50  ;;  %v358_v59 = vpop.f32.mrf.mxu2  ;;  %v402_v60 = vpop.f32.mrf.mxu3  ;;  %v2951_v50 = vld [vmem:[#allocation3 + $0x60] sm:$0xff]  ;;  %v2953_v53 = vld [vmem:[#allocation3 + $0x50] sm:$0xff] }
 0x1e6   :  { %v464_v61 = vmax.f32 %v2674_v48, %v358_v59  ;;  %v465_v62 = vmax.f32 %v2676_v49, %v402_v60 }
 0x1e7   :  { %2162 = vmatmul.msk.bf16.vlgmr.msrb.gmra.mxu2 %vm769_vm4, %v2897_v58 }
 0x1e8   :  { %v493_v39 = vadd.f32 %v2884_v51, %v464_v61  ;;  %v494_v0 = vadd.f32 %v2886_v52, %v465_v62  ;;  %v448_v1 = vpop.f32.mrf.mxu1  ;;  %816 = vmatpush.bf16.msra.mxu0 %v2077_v47  ;;  %v2969_v61 = vld [vmem:[#allocation3 + $0x30] sm:$0xff] }
 0x1e9   :  { %v469_v14 = vmax.f32 %v2687_v55, %v448_v1 }
 0x1ea   :  { %v2907_v4 = vpack.c.bf16 %v494_v0, %v491_v38  ;;  %v511_v5 = vpack.c.bf16 %v493_v39, %v490_v63  ;;  %v2976_v38 = vld [vmem:[#allocation3 + $0x20] sm:$0xff] }
 0x1eb   :  { %v498_v19 = vadd.f32 %v2880_v44, %v469_v14  ;;  %v2158_v14 = vld [vmem:[%s3561_s5 + $0x138] sm:$0xf0] }
 0x1ec   :  { %790 = vmatmul.bf16.vlgmr.msrb.gmra.mxu0 %v511_v5  ;;  %874 = vmatmul.bf16.vlgmr.msrb.gmra.mxu3 %v511_v5  ;;  %v2983_v5 = vld [vmem:[#allocation3 + $0x10] sm:$0xff]  ;;  %v2161_v17 = vor.u32 %v2248_v13, %v2158_v14 }
 0x1ed   :  { %902 = vmatmul.bf16.vlgmr.msra.gmra.mxu1 %v2907_v4  ;;  %v360_v48 = vpop.f32.mrf.mxu2  ;;  %v404_v49 = vpop.f32.mrf.mxu3  ;;  %817 = vmatpush.bf16.msra.mxu0 %v2069_v57 }
 0x1ee   :  { %v467_v20 = vmax.f32 %v2722_v8, %v360_v48  ;;  %v468_v25 = vmax.f32 %v2724_v9, %v404_v49  ;;  %v2992_v49 = vld [vmem:[#allocation3] sm:$0xff] }
 0x1f0   :  { %v451_v16 = vpop.f32.mrf.mxu1  ;;  %v496_v34 = vadd.f32 %v2884_v51, %v467_v20  ;;  %v497_v8 = vadd.f32 %v2886_v52, %v468_v25 }
 0x1f1   :  { %v472_v18 = vmax.f32 %v2735_v15, %v451_v16  ;;  %v2935_v15 = vld [vmem:[#allocation3 + $0x70] sm:$0xff]  ;;  %926 = vmatpush.bf16.msrb.mxu0 %v2161_v17 }
 0x1f2   :  { %977 = vmatpush.msra.mxu2 %v2935_v15  ;;  %1084 = vmatpush.msrb.mxu1 %v2935_v15 }
 0x1f3   :  { %v501_v23 = vadd.f32 %v2880_v44, %v472_v18 }
 0x1f4   :  { %978 = vmatpush.msra.mxu2 %v2951_v50  ;;  %1085 = vmatpush.msrb.mxu1 %v2951_v50 }
 0x1f5   :  { %v363_v26 = vpop.f32.mrf.mxu2  ;;  %v407_v27 = vpop.f32.mrf.mxu3  ;;  %v2928_v30 = vpack.c.bf16 %v501_v23, %v498_v19 }
 0x1f6   :  { %v470_v55 = vmax.f32 %v2770_v32, %v363_v26  ;;  %v471_v31 = vmax.f32 %v2772_v33, %v407_v27  ;;  %979 = vmatpush.msra.mxu2 %v2953_v53  ;;  %1086 = vmatpush.msrb.mxu1 %v2953_v53 }
 0x1f7   :  { %2163 = vmatmul.msk.bf16.gmra.mxu2 %vm769_vm4, %v2928_v30 }
 0x1f8   :  { %v499_v9 = vadd.f32 %v2884_v51, %v470_v55  ;;  %v500_v35 = vadd.f32 %v2886_v52, %v471_v31  ;;  %v453_v36 = vpop.f32.mrf.mxu1  ;;  %980 = vmatpush.msra.mxu2 %v2964_v40  ;;  %1087 = vmatpush.msrb.mxu1 %v2964_v40 }
 0x1f9   :  { %v475_v56 = vmax.f32 %v2786_v45, %v453_v36  ;;  %v3041_v36 = vld [vmem:[#allocation3 + $0x68] sm:$0xff] }
 0x1fa   :  { %v514_v32 = vpack.c.bf16 %v499_v9, %v496_v34  ;;  %v2942_v33 = vpack.c.bf16 %v500_v35, %v497_v8  ;;  %981 = vmatpush.msra.mxu2 %v2969_v61  ;;  %1088 = vmatpush.msrb.mxu1 %v2969_v61  ;;  %v2142_v34 = vld [vmem:[%s3561_s5 + $0x118] sm:$0xf0]  ;;  %v2134_v35 = vld [vmem:[%s3561_s5 + $0x108] sm:$0xf0] }
 0x1fb   :  { %v504_v62 = vadd.f32 %v2880_v44, %v475_v56  ;;  %v3030_v8 = vld [vmem:[#allocation3 + $0x78] sm:$0xff] }
 0x1fc   :  { %795 = vmatmul.bf16.gmra.mxu0 %v514_v32  ;;  %879 = vmatmul.bf16.gmra.mxu3 %v514_v32  ;;  %v563_v56 = vld [vmem:[%s3562_s6] sm:$0x3]  ;;  %s2406_s6 = smov 64  }
 0x1fd   :  { %907 = vmatmul.bf16.gmra.mxu1 %v2942_v33  ;;  %v365_v43 = vpop.f32.mrf.mxu2  ;;  %v409_v46 = vpop.f32.mrf.mxu3  ;;  %982 = vmatpush.msra.mxu2 %v2976_v38  ;;  %v3082_v57 = vperm.slane %v563_v56, 1 }
 0x1fe   :  { %v473_v45 = vmax.f32 %v2824_v2, %v365_v43  ;;  %v474_v39 = vmax.f32 %v2826_v3, %v409_v46  ;;  %1089 = vmatpush.msrb.mxu1 %v2976_v38  ;;  %997 = vmatpush.msra.mxu3 %v3030_v8  ;;  %v3065_v43 = vld [vmem:[#allocation3 + $0x28] sm:$0xff]  ;;  %v3069_v46 = vld [vmem:[#allocation3 + $0x18] sm:$0xff] }
 0x1ff   :  { %983 = vmatpush.msra.mxu2 %v2983_v5 }
 0x200   :  { %v456_v59 = vpop.f32.mrf.mxu1  ;;  %v502_v3 = vadd.f32 %v2884_v51, %v473_v45  ;;  %v503_v6 = vadd.f32 %v2886_v52, %v474_v39  ;;  %1090 = vmatpush.msrb.mxu1 %v2983_v5  ;;  %998 = vmatpush.msra.mxu3 %v3041_v36 }
 0x201   :  { %v478_v60 = vmax.f32 %v2837_v11, %v456_v59  ;;  %984 = vmatpush.msra.mxu2 %v2992_v49 }
 0x202   :  { %1091 = vmatpush.msrb.mxu1 %v2992_v49  ;;  %999 = vmatpush.msra.mxu3 %v3044_v41 }
 0x203   :  { %v507_v63 = vadd.f32 %v2880_v44, %v478_v60  ;;  %1104 = vmatpush.msrb.mxu2 %v3030_v8 }
 0x205   :  { %v368_v11 = vpop.f32.mrf.mxu2  ;;  %v412_v0 = vpop.f32.mrf.mxu3  ;;  %v2981_v1 = vpack.c.bf16 %v507_v63, %v504_v62  ;;  %1105 = vmatpush.msrb.mxu2 %v3041_v36  ;;  %v3087_v62 = vld [vmem:[#allocation3 + $0x8] sm:$0xff] }
 0x206   :  { %v476_v48 = vmax.f32 %v2854_v21, %v368_v11  ;;  %v477_v2 = vmax.f32 %v2856_v22, %v412_v0 }
 0x207   :  { %2164 = vmatmul.msk.bf16.gmra.mxu2 %vm769_vm4, %v2981_v1 }
 0x208   :  { %v505_v7 = vadd.f32 %v2884_v51, %v476_v48  ;;  %v506_v10 = vadd.f32 %v2886_v52, %v477_v2  ;;  %v458_v21 = vpop.f32.mrf.mxu1  ;;  %1106 = vmatpush.msrb.mxu2 %v3044_v41 }
 0x209   :  { %v481_v16 = vmax.f32 %v2858_v24, %v458_v21 }
 0x20a   :  { %v517_v22 = vpack.c.bf16 %v505_v7, %v502_v3  ;;  %v518_v12 = vpack.c.bf16 %v506_v10, %v503_v6  ;;  %v565_v10 = vperm.slane %v563_v56, 0 }
 0x20b   :  { %v510_v20 = vadd.f32 %v2880_v44, %v481_v16  ;;  %v2246_v44 = vld [vmem:[%s3561_s5 + $0x124] sm:$0xf] }
 0x20c   :  { %800 = vmatmul.bf16.gmra.mxu0 %v517_v22  ;;  %884 = vmatmul.bf16.gmra.mxu3 %v517_v22 }
 0x20d   :  { %912 = vmatmul.bf16.gmra.mxu1 %v518_v12  ;;  %v370_v18 = vpop.f32.mrf.mxu2  ;;  %v414_v19 = vpop.f32.mrf.mxu3  ;;  %v3011_v26 = vpack.c.bf16 %v510_v20, %v510_v20 }
 0x20e   :  { %v479_v23 = vmax.f32 %v2866_v28, %v370_v18  ;;  %v480_v25 = vmax.f32 %v2868_v29, %v414_v19  ;;  %v2150_v28 = vld [vmem:[%s3561_s5 + $0x128] sm:$0xf0] }
 0x20f   :  { %v2153_v29 = vor.u32 %v2246_v44, %v2150_v28 }
 0x210   :  { %v508_v27 = vadd.f32 %v2884_v51, %v479_v23  ;;  %v509_v24 = vadd.f32 %v2886_v52, %v480_v25  ;;  %v2405_v51 = vmov 0.0   ;;  %v2244_v52 = vld [vmem:[%s3561_s5 + $0x114] sm:$0xf] }
 0x211   :  { %927 = vmatpush.bf16.msrb.mxu0 %v2153_v29  ;;  %v2145_v9 = vor.u32 %v2244_v52, %v2142_v34 }
 0x212   :  { %v520_v55 = vpack.c.bf16 %v508_v27, %v508_v27  ;;  %v521_v31 = vpack.c.bf16 %v509_v24, %v509_v24 }
 0x215   :  { %928 = vmatpush.bf16.msrb.mxu0 %v2145_v9 }
 0x217   :  { %2165 = vmatmul.msk.bf16.gmra.mxu2 %vm769_vm4, %v3011_v26 }
 0x21c   :  { %805 = vmatmul.bf16.gmra.mxu0 %v520_v55  ;;  %889 = vmatmul.bf16.gmra.mxu3 %v520_v55 }
 0x21d   :  { %917 = vmatmul.bf16.gmra.mxu1 %v521_v31 }
 0x227   :  { %985 = vmatmul.f32.vlgmr.msra.gmra.mxu2 %v2405_v51 }
 0x22c   :  { %818 = vmatmul.bf16.vlgmr.msra.gmra.mxu0 %v2907_v4  ;;  %v2242_v4 = vld [vmem:[%s3561_s5 + $0x104] sm:$0xf] }
 0x22d   :  { %v2137_v32 = vor.u32 %v2242_v4, %v2134_v35 }
 0x22f   :  { %929 = vmatpush.bf16.msrb.mxu0 %v2137_v32 }
 0x233   :  { %1484 = vmatpush.msra.mxu0 %v2935_v15 }
 0x235   :  { %1485 = vmatpush.msra.mxu0 %v2951_v50 }
 0x237   :  { %1486 = vmatpush.msra.mxu0 %v2953_v53 }
 0x239   :  { %1487 = vmatpush.msra.mxu0 %v2964_v40 }
 0x23b   :  { %1488 = vmatpush.msra.mxu0 %v2969_v61 }
 0x23c   :  { %823 = vmatmul.bf16.gmra.mxu0 %v2942_v33  ;;  %v3057_v33 = vld [vmem:[#allocation3 + $0x48] sm:$0xff] }
 0x23d   :  { %1489 = vmatpush.msra.mxu0 %v2976_v38  ;;  %1000 = vmatpush.msra.mxu3 %v3057_v33 }
 0x23e   :  { %1107 = vmatpush.msrb.mxu2 %v3057_v33 }
 0x23f   :  { %1490 = vmatpush.msra.mxu0 %v2983_v5  ;;  %1001 = vmatpush.msra.mxu3 %v3061_v42 }
 0x240   :  { %1108 = vmatpush.msrb.mxu2 %v3061_v42 }
 0x241   :  { %1491 = vmatpush.msra.mxu0 %v2992_v49  ;;  %1002 = vmatpush.msra.mxu3 %v3065_v43 }
 0x242   :  { %1109 = vmatpush.msrb.mxu2 %v3065_v43 }
 0x243   :  { %1003 = vmatpush.msra.mxu3 %v3069_v46 }
 0x244   :  { %1110 = vmatpush.msrb.mxu2 %v3069_v46 }
 0x245   :  { %1004 = vmatpush.msra.mxu3 %v3087_v62 }
 0x246   :  { %1111 = vmatpush.msrb.mxu2 %v3087_v62  ;;  %1005 = vmatmul.f32.vlgmr.msra.gmra.mxu3 %v2405_v51 }
 0x248   :  { %1230 = vmatpush.msra.mxu2 %v2935_v15 }
 0x24a   :  { %1231 = vmatpush.msra.mxu2 %v2951_v50 }
 0x24c   :  { %828 = vmatmul.bf16.gmra.mxu0 %v518_v12  ;;  %1232 = vmatpush.msra.mxu2 %v2953_v53 }
 0x24e   :  { %1233 = vmatpush.msra.mxu2 %v2964_v40 }
 0x250   :  { %1234 = vmatpush.msra.mxu2 %v2969_v61 }
 0x252   :  { %1235 = vmatpush.msra.mxu2 %v2976_v38 }
 0x254   :  { %1236 = vmatpush.msra.mxu2 %v2983_v5 }
 0x256   :  { %1237 = vmatpush.msra.mxu2 %v2992_v49 }
 0x25c   :  { %833 = vmatmul.bf16.gmra.mxu0 %v521_v31 }
 0x269   :  { %v3071_v47 = vpop.f32.mrf.mxu0 }
 0x26a   :  { %v3075_v54 = vpop.f32.mrf.mxu2  ;;  %v903_v37 = vpop.f32.mrf.mxu1 }
 0x26c   :  { %2166 = vmatmul.msk.bf16.vlgmr.msrb.gmra.mxu0 %vm769_vm4, %v2897_v58 }
 0x26d   :  { %1631 = vmatpush.msrb.mxu0 %v3030_v8 }
 0x26f   :  { %v875_v59 = vpop.f32.mrf.mxu3  ;;  %1632 = vmatpush.msrb.mxu0 %v3041_v36 }
 0x270   :  { %v876_v60 = vadd.f32 %v875_v59, %v3082_v57 }
 0x271   :  { %v3089_v45 = vpop.f32.mrf.mxu0  ;;  %1633 = vmatpush.msrb.mxu0 %v3044_v41 }
 0x272   :  { %v3093_v63 = vpop.f32.mrf.mxu2  ;;  %v905_v58 = vpop.f32.mrf.mxu1  ;;  %v3095_v39 = vadd.f32 %v903_v37, %v876_v60 }
 0x273   :  { %1634 = vmatpush.msrb.mxu0 %v3057_v33 }
 0x275   :  { %1635 = vmatpush.msrb.mxu0 %v3061_v42 }
 0x277   :  { %v877_v11 = vpop.f32.mrf.mxu3  ;;  %1636 = vmatpush.msrb.mxu0 %v3065_v43 }
 0x278   :  { %v878_v0 = vadd.f32 %v877_v11, %v3082_v57 }
 0x279   :  { %v3105_v48 = vpop.f32.mrf.mxu0  ;;  %1637 = vmatpush.msrb.mxu0 %v3069_v46 }
 0x27a   :  { %v3108_v2 = vpop.f32.mrf.mxu2  ;;  %v908_v3 = vpop.f32.mrf.mxu1  ;;  %v3110_v6 = vadd.f32 %v905_v58, %v878_v0  ;;  %v792_v0 = vadd.f32 %v3071_v47, %v565_v10  ;;  %v797_v47 = vadd.f32 %v3105_v48, %v565_v10 }
 0x27b   :  { %1638 = vmatpush.msrb.mxu0 %v3087_v62 }
 0x27c   :  { %2167 = vmatmul.msk.bf16.gmra.mxu0 %vm769_vm4, %v2928_v30 }
 0x27f   :  { %v880_v7 = vpop.f32.mrf.mxu3 }
 0x280   :  { %v881_v21 = vadd.f32 %v880_v7, %v3082_v57 }
 0x281   :  { %v798_v22 = vpop.f32.mrf.mxu0 }
 0x282   :  { %v799_v12 = vadd.f32 %v798_v22, %v565_v10  ;;  %v854_v13 = vpop.f32.mrf.mxu2  ;;  %v910_v14 = vpop.f32.mrf.mxu1  ;;  %v3121_v16 = vadd.f32 %v908_v3, %v881_v21 }
 0x287   :  { %v882_v17 = vpop.f32.mrf.mxu3 }
 0x288   :  { %v883_v30 = vadd.f32 %v882_v17, %v3082_v57  ;;  %v794_v17 = vadd.f32 %v3089_v45, %v565_v10 }
 0x289   :  { %v801_v18 = vpop.f32.mrf.mxu0 }
 0x28a   :  { %v802_v19 = vadd.f32 %v801_v18, %v565_v10  ;;  %v857_v20 = vpop.f32.mrf.mxu2  ;;  %v913_v23 = vpop.f32.mrf.mxu1  ;;  %v911_v25 = vadd.f32 %v910_v14, %v883_v30 }
 0x28c   :  { %2168 = vmatmul.msk.bf16.gmra.mxu0 %vm769_vm4, %v2981_v1 }
 0x28f   :  { %v885_v27 = vpop.f32.mrf.mxu3 }
 0x290   :  { %v886_v24 = vadd.f32 %v885_v27, %v3082_v57 }
 0x291   :  { %v803_v55 = vpop.f32.mrf.mxu0 }
 0x292   :  { %v804_v31 = vadd.f32 %v803_v55, %v565_v10  ;;  %v859_v44 = vpop.f32.mrf.mxu2  ;;  %v915_v28 = vpop.f32.mrf.mxu1  ;;  %v914_v29 = vadd.f32 %v913_v23, %v886_v24 }
 0x297   :  { %v887_v51 = vpop.f32.mrf.mxu3 }
 0x298   :  { %v888_v52 = vadd.f32 %v887_v51, %v3082_v57 }
 0x299   :  { %v806_v34 = vpop.f32.mrf.mxu0 }
 0x29a   :  { %v807_v9 = vadd.f32 %v806_v34, %v565_v10  ;;  %v862_v4 = vpop.f32.mrf.mxu2  ;;  %v918_v35 = vpop.f32.mrf.mxu1  ;;  %v916_v32 = vadd.f32 %v915_v28, %v888_v52 }
 0x29c   :  { %2169 = vmatmul.msk.bf16.gmra.mxu0 %vm769_vm4, %v3011_v26 }
 0x29f   :  { %v890_v1 = vpop.f32.mrf.mxu3 }
 0x2a0   :  { %v891_v37 = vadd.f32 %v890_v1, %v3082_v57 }
 0x2a1   :  { %v808_v56 = vpop.f32.mrf.mxu0 }
 0x2a2   :  { %v864_v59 = vpop.f32.mrf.mxu2  ;;  %v920_v60 = vpop.f32.mrf.mxu1  ;;  %v919_v58 = vadd.f32 %v918_v35, %v891_v37 }
 0x2a7   :  { %v892_v11 = vpop.f32.mrf.mxu3 }
 0x2a9   :  { %v819_v3 = vpop.f32.mrf.mxu0 }
 0x2aa   :  { %v820_v7 = vadd.f32 %v819_v3, %v792_v0  ;;  %v986_v21 = vpop.f32.mrf.mxu2 }
 0x2ac   :  { %v848_v22 = vadd.f32 %v3075_v54, %v820_v7 }
 0x2ae   :  { %v1009_v14 = vadd.f32 %v986_v21, %v848_v22 }
 0x2b0   :  { %2271 = vtanh.f32 %v1009_v14  ;;  %v1011_v11 = vmul.f32 0.5, %v1009_v14 }
 0x2b1   :  { %v821_v26 = vpop.f32.mrf.mxu0 }
 0x2b2   :  { %v822_v30 = vadd.f32 %v821_v26, %v794_v17  ;;  %2273 = vtanh.f32 %v1011_v11  ;;  %v1066_v11 = vld [vmem:[%s3564_s8 + $0x8] sm:$0xff] }
 0x2b4   :  { %v3135_v57 = vadd.f32 %v3093_v63, %v822_v30 }
 0x2b6   :  { %v2272_v18 = vpop.eup %2271 }
 0x2b7   :  { %1018 = vrot.lane.b32.xlu1 %v2272_v18, %s2406_s6 }
 0x2b8   :  { %v2274_v7 = vpop.eup %2273 }
 0x2b9   :  { %v824_v23 = vpop.f32.mrf.mxu0  ;;  %v1013_v22 = vadd.f32 1.0, %v2274_v7 }
 0x2ba   :  { %v825_v27 = vadd.f32 %v824_v23, %v797_v47 }
 0x2bc   :  { %v3140_v24 = vadd.f32 %v3108_v2, %v825_v27 }
 0x2c1   :  { %v826_v54 = vpop.f32.mrf.mxu0 }
 0x2c2   :  { %v827_v55 = vadd.f32 %v826_v54, %v799_v12 }
 0x2c4   :  { %v3142_v45 = vadd.f32 %v854_v13, %v827_v55 }
 0x2c9   :  { %v829_v28 = vpop.f32.mrf.mxu0  ;;  %v1006_v0 = vpop.f32.mrf.mxu3 }
 0x2ca   :  { %v830_v51 = vadd.f32 %v829_v28, %v802_v19 }
 0x2cc   :  { %v3144_v52 = vadd.f32 %v857_v20, %v830_v51 }
 0x2d1   :  { %v831_v63 = vpop.f32.mrf.mxu0 }
 0x2d2   :  { %v832_v34 = vadd.f32 %v831_v63, %v804_v31 }
 0x2d4   :  { %v3146_v35 = vadd.f32 %v859_v44, %v832_v34 }
 0x2d9   :  { %v834_v1 = vpop.f32.mrf.mxu0 }
 0x2da   :  { %v835_v37 = vadd.f32 %v834_v1, %v807_v9 }
 0x2dc   :  { %v3148_v48 = vadd.f32 %v862_v4, %v835_v37  ;;  %v1072_v37 = vld [vmem:[%s3564_s8 + $0x38] sm:$0xff] }
 0x2dd   :  { %1210 = vmatpush.msra.mxu1 %v1072_v37  ;;  %v1174_v37 = vld [vmem:[%s3564_s8 + $0x58] sm:$0xff] }
 0x2e1   :  { %v836_v10 = vpop.f32.mrf.mxu0 }
 0x2e2   :  { %v1071_v10 = vld [vmem:[%s3564_s8 + $0x30] sm:$0xff] }
 0x2e3   :  { %1211 = vmatpush.msra.mxu1 %v1071_v10  ;;  %v1173_v10 = vld [vmem:[%s3564_s8 + $0x50] sm:$0xff] }
 0x2e9   :  { %v931_v56 = vpop.f32.mrf.mxu0 }
 0x2ea   :  { %v3151_v2 = vadd.f32 %v931_v56, %v3095_v39  ;;  %v1070_v56 = vld [vmem:[%s3564_s8 + $0x28] sm:$0xff] }
 0x2eb   :  { %1212 = vmatpush.msra.mxu1 %v1070_v56  ;;  %v1172_v56 = vld [vmem:[%s3564_s8 + $0x48] sm:$0xff] }
 0x2f1   :  { %v933_v12 = vpop.f32.mrf.mxu0 }
 0x2f2   :  { %v3154_v13 = vadd.f32 %v933_v12, %v3110_v6 }
 0x2f9   :  { %v936_v19 = vpop.f32.mrf.mxu0 }
 0x2fa   :  { %v3157_v20 = vadd.f32 %v936_v19, %v3121_v16 }
 0x301   :  { %v938_v31 = vpop.f32.mrf.mxu0 }
 0x302   :  { %v3159_v44 = vadd.f32 %v938_v31, %v911_v25  ;;  %v1014_v25 = vmul.f32 0.5, %v1013_v22  ;;  %v1069_v31 = vld [vmem:[%s3564_s8 + $0x20] sm:$0xff] }
 0x303   :  { %1213 = vmatpush.msra.mxu1 %v1069_v31 }
 0x304   :  { %v1016_v47 = vmul.f32 0.0, %v1014_v25 }
 0x309   :  { %v941_v59 = vpop.f32.mrf.mxu0 }
 0x30a   :  { %v3161_v9 = vadd.f32 %v941_v59, %v914_v29  ;;  %v1068_v59 = vld [vmem:[%s3564_s8 + $0x18] sm:$0xff] }
 0x30b   :  { %1214 = vmatpush.msra.mxu1 %v1068_v59 }
 0x311   :  { %v943_v4 = vpop.f32.mrf.mxu0 }
 0x312   :  { %v3163_v60 = vadd.f32 %v943_v4, %v916_v32  ;;  %v1067_v4 = vld [vmem:[%s3564_s8 + $0x10] sm:$0xff] }
 0x313   :  { %1215 = vmatpush.msra.mxu1 %v1067_v4 }
 0x315   :  { %1216 = vmatpush.msra.mxu1 %v1066_v11 }
 0x319   :  { %v946_v39 = vpop.f32.mrf.mxu0 }
 0x31a   :  { %v947_v3 = vadd.f32 %v946_v39, %v919_v58  ;;  %v1065_v39 = vld [vmem:[%s3564_s8] sm:$0xff] }
 0x31b   :  { %1217 = vmatpush.msra.mxu1 %v1065_v39 }
 0x31c   :  { %v1010_v6 = vadd.f32 %v1006_v0, %v947_v3 }
 0x31e   :  { %2275 = vtanh.f32 %v1010_v6  ;;  %v1033_v32 = vmul.f32 0.5, %v1010_v6 }
 0x320   :  { %2277 = vtanh.f32 %v1033_v32 }
 0x321   :  { %v948_v21 = vpop.f32.mrf.mxu0 }
 0x324   :  { %v2276_v16 = vpop.eup %2275 }
 0x325   :  { %1040 = vrot.lane.b32.xlu2 %v2276_v16, %s2406_s6 }
 0x326   :  { %v2278_v14 = vpop.eup %2277 }
 0x327   :  { %v1035_v26 = vadd.f32 1.0, %v2278_v14 }
 0x329   :  { %v1019_v17 = vpop.permute.xlu1 %1018  ;;  %v1036_v58 = vmul.f32 0.5, %v1035_v26 }
 0x32a   :  { %v1021_v29 = vmul.f32 %v1019_v17, %v1014_v25 }
 0x32b   :  { %v1038_v55 = vmul.f32 0.0, %v1036_v58 }
 0x32c   :  { %1023 = vrot.lane.b32.xlu0 %v1021_v29, %s2407_s11 }
 0x37f   :  { %v1041_v30 = vpop.permute.xlu2 %1040 }
 0x380   :  { %v1043_v18 = vmul.f32 %v1041_v30, %v1036_v58 }
 0x382   :  { %1045 = vrot.lane.b32.xlu1 %v1043_v18, %s2407_s11 }
 0x39e   :  { %v1024_v23 = vpop.permute.xlu0 %1023 }
 0x39f   :  { %v3168_v27 = vadd.f32 %v1024_v23, %v1016_v47 }
 0x3a1   :  { %2279 = vtanh.f32 %v3168_v27 }
 0x3a7   :  { %v2280_v54 = vpop.eup %2279 }
 0x3a8   :  { %1029 = vrot.lane.b32.xlu2 %v2280_v54, %s2406_s6 }
 0x3f4   :  { %v1046_v28 = vpop.permute.xlu1 %1045 }
 0x3f5   :  { %v3172_v51 = vadd.f32 %v1046_v28, %v1038_v55 }
 0x3f7   :  { %2281 = vtanh.f32 %v3172_v51 }
 0x3fd   :  { %v2282_v63 = vpop.eup %2281 }
 0x3fe   :  { %1051 = vrot.lane.b32.xlu0 %v2282_v63, %s2406_s6 }
 0x402   :  { %v1030_v34 = vpop.permute.xlu2 %1029 }
 0x403   :  { %v1032_v1 = vmul.f32 %v1030_v34, %v1014_v25  ;;  %v1177_v34 = vld [vmem:[%s3564_s8 + $0x70] sm:$0xff] }
 0x405   :  { %1056 = vrot.lane.b32.xlu1 %v1032_v1, %s2407_s11  ;;  %v1175_v1 = vld [vmem:[%s3564_s8 + $0x60] sm:$0xff] }
 0x470   :  { %v1052_v12 = vpop.permute.xlu0 %1051 }
 0x471   :  { %v1054_v19 = vmul.f32 %v1052_v12, %v1036_v58  ;;  %v1171_v12 = vld [vmem:[%s3564_s8 + $0x40] sm:$0xff] }
 0x473   :  { %1060 = vrot.lane.b32.xlu2 %v1054_v19, %s2406_s6 }
 0x477   :  { %v1057_v0 = vpop.permute.xlu1 %1056 }
 0x4cd   :  { %v1061_v3 = vpop.permute.xlu2 %1060 }
 0x4ce   :  { %v1064_v6 = vsel %vm1063_vm5, %v1057_v0, %v1061_v3 }
 0x4cf   :  { %2170 = vmatmul.msk.f32.vlgmr.msrb.gmra.mxu1 %vm769_vm4, %v1064_v6  ;;  %2171 = vmatmul.msk.f32.vlgmr.msrb.gmra.mxu2 %vm769_vm4, %v1064_v6 }
 0x4d0   :  { %1357 = vmatpush.msrb.mxu2 %v2935_v15 }
 0x4d2   :  { %1358 = vmatpush.msrb.mxu2 %v2951_v50 }
 0x4d4   :  { %1359 = vmatpush.msrb.mxu2 %v2953_v53 }
 0x4d6   :  { %1360 = vmatpush.msrb.mxu2 %v2964_v40 }
 0x4d7   :  { %2173 = vmatmul.msk.f32.vlgmr.msra.gmra.mxu1 %vm769_vm4, %v1064_v6 }
 0x4d8   :  { %1361 = vmatpush.msrb.mxu2 %v2969_v61 }
 0x4da   :  { %1362 = vmatpush.msrb.mxu2 %v2976_v38 }
 0x4dc   :  { %1363 = vmatpush.msrb.mxu2 %v2983_v5 }
 0x4de   :  { %1364 = vmatpush.msrb.mxu2 %v2992_v49 }
 0x54c   :  { %v1093_v7 = vpop.f32.mrf.mxu1 }
 0x54d   :  { %v1116_v21 = vadd.f32 %v1093_v7, %v3135_v57 }
 0x54f   :  { %2283 = vtanh.f32 %v1116_v21  ;;  %v1118_v61 = vmul.f32 0.5, %v1116_v21 }
 0x552   :  { %v1113_v15 = vpop.f32.mrf.mxu2 }
 0x553   :  { %v1117_v50 = vadd.f32 %v1113_v15, %v3163_v60 }
 0x555   :  { %v2284_v53 = vpop.eup %2283  ;;  %2285 = vtanh.f32 %v1117_v50  ;;  %v1140_v16 = vmul.f32 0.5, %v1117_v50 }
 0x556   :  { %1125 = vrot.lane.b32.xlu0 %v2284_v53, %s2406_s6  ;;  %2287 = vtanh.f32 %v1118_v61 }
 0x557   :  { %2289 = vtanh.f32 %v1140_v16 }
 0x55b   :  { %v2286_v40 = vpop.eup %2285 }
 0x55c   :  { %1147 = vrot.lane.b32.xlu1 %v2286_v40, %s2406_s6  ;;  %v2288_v22 = vpop.eup %2287 }
 0x55d   :  { %v1120_v25 = vadd.f32 1.0, %v2288_v22  ;;  %v2290_v17 = vpop.eup %2289 }
 0x55e   :  { %v1142_v32 = vadd.f32 1.0, %v2290_v17 }
 0x55f   :  { %v1121_v29 = vmul.f32 0.5, %v1120_v25 }
 0x560   :  { %v1143_v60 = vmul.f32 0.5, %v1142_v32 }
 0x561   :  { %v1123_v30 = vmul.f32 %v1121_v29, %v3168_v27  ;;  %v1178_v27 = vld [vmem:[%s3564_s8 + $0x78] sm:$0xff] }
 0x562   :  { %v1145_v54 = vmul.f32 %v1143_v60, %v3172_v51  ;;  %1190 = vmatpush.msrb.mxu3 %v1178_v27  ;;  %v1176_v51 = vld [vmem:[%s3564_s8 + $0x68] sm:$0xff] }
 0x564   :  { %1191 = vmatpush.msrb.mxu3 %v1177_v34 }
 0x566   :  { %1192 = vmatpush.msrb.mxu3 %v1176_v51  ;;  %v1323_v51 = vld [vmem:[%s3564_s8 + $0xb0] sm:$0xff] }
 0x568   :  { %1193 = vmatpush.msrb.mxu3 %v1175_v1  ;;  %v1322_v1 = vld [vmem:[%s3564_s8 + $0xa8] sm:$0xff] }
 0x56a   :  { %1194 = vmatpush.msrb.mxu3 %v1174_v37  ;;  %v1321_v37 = vld [vmem:[%s3564_s8 + $0xa0] sm:$0xff] }
 0x56c   :  { %1195 = vmatpush.msrb.mxu3 %v1173_v10  ;;  %v1320_v10 = vld [vmem:[%s3564_s8 + $0x98] sm:$0xff] }
 0x56e   :  { %1196 = vmatpush.msrb.mxu3 %v1172_v56  ;;  %v1319_v56 = vld [vmem:[%s3564_s8 + $0x90] sm:$0xff] }
 0x570   :  { %1197 = vmatpush.msrb.mxu3 %v1171_v12  ;;  %v1318_v12 = vld [vmem:[%s3564_s8 + $0x88] sm:$0xff] }
 0x572   :  { %1250 = vmatpush.msra.mxu3 %v3030_v8 }
 0x574   :  { %1251 = vmatpush.msra.mxu3 %v3041_v36 }
 0x576   :  { %1252 = vmatpush.msra.mxu3 %v3044_v41 }
 0x578   :  { %1253 = vmatpush.msra.mxu3 %v3057_v33 }
 0x57a   :  { %1254 = vmatpush.msra.mxu3 %v3061_v42 }
 0x57c   :  { %1255 = vmatpush.msra.mxu3 %v3065_v43 }
 0x57e   :  { %1256 = vmatpush.msra.mxu3 %v3069_v46 }
 0x580   :  { %1257 = vmatpush.msra.mxu3 %v3087_v62 }
 0x5c8   :  { %v1126_v57 = vpop.permute.xlu0 %1125 }
 0x5c9   :  { %v1128_v14 = vmul.f32 %v1126_v57, %v1121_v29 }
 0x5cb   :  { %1130 = vrot.lane.b32.xlu2 %v1128_v14, %s2407_s11 }
 0x5ce   :  { %v1148_v26 = vpop.permute.xlu1 %1147 }
 0x5cf   :  { %v1150_v58 = vmul.f32 %v1148_v26, %v1143_v60 }
 0x5d1   :  { %1152 = vrot.lane.b32.xlu0 %v1150_v58, %s2407_s11 }
 0x625   :  { %v1131_v18 = vpop.permute.xlu2 %1130 }
 0x626   :  { %v3221_v47 = vadd.f32 %v1131_v18, %v1123_v30 }
 0x628   :  { %2291 = vtanh.f32 %v3221_v47 }
 0x62e   :  { %v2292_v23 = vpop.eup %2291 }
 0x62f   :  { %1136 = vrot.lane.b32.xlu1 %v2292_v23, %s2406_s6 }
 0x643   :  { %v1153_v55 = vpop.permute.xlu0 %1152 }
 0x644   :  { %v3226_v28 = vadd.f32 %v1153_v55, %v1145_v54 }
 0x646   :  { %2293 = vtanh.f32 %v3226_v28 }
 0x64c   :  { %v2294_v63 = vpop.eup %2293 }
 0x64d   :  { %1158 = vrot.lane.b32.xlu2 %v2294_v63, %s2406_s6 }
 0x6a1   :  { %v1137_v19 = vpop.permute.xlu1 %1136 }
 0x6a2   :  { %v1139_v31 = vmul.f32 %v1137_v19, %v1121_v29  ;;  %v1317_v19 = vld [vmem:[%s3564_s8 + $0x80] sm:$0xff] }
 0x6a4   :  { %1163 = vrot.lane.b32.xlu0 %v1139_v31, %s2407_s11 }
 0x6a7   :  { %v1159_v59 = vpop.permute.xlu2 %1158 }
 0x6a8   :  { %v1161_v4 = vmul.f32 %v1159_v59, %v1143_v60 }
 0x6aa   :  { %1167 = vrot.lane.b32.xlu1 %v1161_v4, %s2406_s6 }
 0x716   :  { %v1164_v11 = vpop.permute.xlu0 %1163 }
 0x71c   :  { %v1168_v39 = vpop.permute.xlu1 %1167 }
 0x71d   :  { %v1170_v0 = vsel %vm1063_vm5, %v1164_v11, %v1168_v39 }
 0x71e   :  { %2172 = vmatmul.msk.f32.vlgmr.msrb.gmra.mxu3 %vm769_vm4, %v1170_v0  ;;  %2174 = vmatmul.msk.f32.vlgmr.msra.gmra.mxu2 %vm769_vm4, %v1170_v0 }
 0x71f   :  { %1377 = vmatpush.msrb.mxu3 %v3030_v8  ;;  %1504 = vmatpush.msra.mxu2 %v3030_v8 }
 0x721   :  { %1378 = vmatpush.msrb.mxu3 %v3041_v36  ;;  %1505 = vmatpush.msra.mxu2 %v3041_v36 }
 0x723   :  { %1379 = vmatpush.msrb.mxu3 %v3044_v41  ;;  %1506 = vmatpush.msra.mxu2 %v3044_v41 }
 0x725   :  { %1380 = vmatpush.msrb.mxu3 %v3057_v33  ;;  %1507 = vmatpush.msra.mxu2 %v3057_v33 }
 0x726   :  { %2175 = vmatmul.msk.f32.vlgmr.msra.gmra.mxu3 %vm769_vm4, %v1170_v0 }
 0x727   :  { %1381 = vmatpush.msrb.mxu3 %v3061_v42  ;;  %1508 = vmatpush.msra.mxu2 %v3061_v42 }
 0x729   :  { %1382 = vmatpush.msrb.mxu3 %v3065_v43  ;;  %1509 = vmatpush.msra.mxu2 %v3065_v43 }
 0x72b   :  { %1383 = vmatpush.msrb.mxu3 %v3069_v46  ;;  %1510 = vmatpush.msra.mxu2 %v3069_v46 }
 0x72d   :  { %1384 = vmatpush.msrb.mxu3 %v3087_v62  ;;  %1511 = vmatpush.msra.mxu2 %v3087_v62 }
 0x7a1   :  { %v3284_v3 = vpop.f32.mrf.mxu3  ;;  %v1239_v6 = vpop.f32.mrf.mxu2 }
 0x7a2   :  { %v1262_v7 = vadd.f32 %v1239_v6, %v3140_v24 }
 0x7a4   :  { %2295 = vtanh.f32 %v1262_v7  ;;  %v1264_v40 = vmul.f32 0.5, %v1262_v7 }
 0x7a9   :  { %v1259_v21 = vpop.f32.mrf.mxu3 }
 0x7aa   :  { %v2296_v15 = vpop.eup %2295  ;;  %v1263_v50 = vadd.f32 %v1259_v21, %v3161_v9 }
 0x7ab   :  { %1271 = vrot.lane.b32.xlu2 %v2296_v15, %s2406_s6 }
 0x7ac   :  { %2297 = vtanh.f32 %v1263_v50  ;;  %v1286_v24 = vmul.f32 0.5, %v1263_v50 }
 0x7ad   :  { %2299 = vtanh.f32 %v1264_v40 }
 0x7ae   :  { %2301 = vtanh.f32 %v1286_v24 }
 0x7b2   :  { %v2298_v53 = vpop.eup %2297 }
 0x7b3   :  { %1293 = vrot.lane.b32.xlu0 %v2298_v53, %s2406_s6  ;;  %v2300_v61 = vpop.eup %2299 }
 0x7b4   :  { %v1266_v16 = vadd.f32 1.0, %v2300_v61  ;;  %v2302_v29 = vpop.eup %2301 }
 0x7b5   :  { %v1288_v57 = vadd.f32 1.0, %v2302_v29 }
 0x7b6   :  { %v1267_v22 = vmul.f32 0.5, %v1266_v16 }
 0x7b7   :  { %v1289_v9 = vmul.f32 0.5, %v1288_v57 }
 0x7b8   :  { %v1269_v60 = vmul.f32 %v1267_v22, %v3221_v47 }
 0x7b9   :  { %v1291_v30 = vmul.f32 %v1289_v9, %v3226_v28  ;;  %v1324_v28 = vld [vmem:[%s3564_s8 + $0xb8] sm:$0xff] }
 0x7ba   :  { %1336 = vmatpush.msrb.mxu1 %v1324_v28  ;;  %v1446_v28 = vld [vmem:[%s3564_s8 + $0xd0] sm:$0xff] }
 0x7bc   :  { %1337 = vmatpush.msrb.mxu1 %v1323_v51  ;;  %v1445_v51 = vld [vmem:[%s3564_s8 + $0xc8] sm:$0xff] }
 0x7be   :  { %1338 = vmatpush.msrb.mxu1 %v1322_v1  ;;  %v1444_v1 = vld [vmem:[%s3564_s8 + $0xc0] sm:$0xff] }
 0x7c0   :  { %1339 = vmatpush.msrb.mxu1 %v1321_v37  ;;  %v3370_v37 = vld [vmem:[#allocation3 + $0x70] sm:$0xff] }
 0x7c2   :  { %1340 = vmatpush.msrb.mxu1 %v1320_v10  ;;  %v3373_v10 = vld [vmem:[#allocation3 + $0x60] sm:$0xff] }
 0x7c4   :  { %1341 = vmatpush.msrb.mxu1 %v1319_v56  ;;  %v3376_v56 = vld [vmem:[#allocation3 + $0x50] sm:$0xff] }
 0x7c6   :  { %1342 = vmatpush.msrb.mxu1 %v1318_v12  ;;  %v3379_v12 = vld [vmem:[#allocation3 + $0x40] sm:$0xff] }
 0x7c8   :  { %1343 = vmatpush.msrb.mxu1 %v1317_v19  ;;  %v3382_v19 = vld [vmem:[#allocation3 + $0x30] sm:$0xff] }
 0x805   :  { %v1272_v25 = vpop.permute.xlu2 %1271 }
 0x806   :  { %v1274_v17 = vmul.f32 %v1272_v25, %v1267_v22 }
 0x808   :  { %1276 = vrot.lane.b32.xlu1 %v1274_v17, %s2407_s11 }
 0x825   :  { %v1294_v32 = vpop.permute.xlu0 %1293 }
 0x826   :  { %v1296_v14 = vmul.f32 %v1294_v32, %v1289_v9 }
 0x828   :  { %1298 = vrot.lane.b32.xlu2 %v1296_v14, %s2407_s11 }
 0x87a   :  { %v1277_v26 = vpop.permute.xlu1 %1276 }
 0x87b   :  { %v3293_v58 = vadd.f32 %v1277_v26, %v1269_v60 }
 0x87d   :  { %2303 = vtanh.f32 %v3293_v58 }
 0x882   :  { %v1299_v18 = vpop.permute.xlu2 %1298 }
 0x883   :  { %v2304_v23 = vpop.eup %2303  ;;  %v1301_v54 = vadd.f32 %v1299_v18, %v1291_v30 }
 0x884   :  { %1282 = vrot.lane.b32.xlu0 %v2304_v23, %s2406_s6 }
 0x885   :  { %2305 = vtanh.f32 %v1301_v54 }
 0x88b   :  { %v2306_v55 = vpop.eup %2305 }
 0x88c   :  { %1304 = vrot.lane.b32.xlu1 %v2306_v55, %s2406_s6 }
 0x8f6   :  { %v1283_v63 = vpop.permute.xlu0 %1282 }
 0x8f7   :  { %v1285_v27 = vmul.f32 %v1283_v63, %v1267_v22  ;;  %v1450_v63 = vld [vmem:[%s3564_s8 + $0xf0] sm:$0xff] }
 0x8f9   :  { %1309 = vrot.lane.b32.xlu2 %v1285_v27, %s2407_s11  ;;  %v1449_v27 = vld [vmem:[%s3564_s8 + $0xe8] sm:$0xff] }
 0x8fe   :  { %v1305_v47 = vpop.permute.xlu1 %1304 }
 0x8ff   :  { %v1307_v34 = vmul.f32 %v1305_v47, %v1289_v9  ;;  %v1448_v47 = vld [vmem:[%s3564_s8 + $0xe0] sm:$0xff] }
 0x901   :  { %1313 = vrot.lane.b32.xlu0 %v1307_v34, %s2406_s6  ;;  %v1447_v34 = vld [vmem:[%s3564_s8 + $0xd8] sm:$0xff] }
 0x953   :  { %v1310_v31 = vpop.permute.xlu2 %1309 }
 0x973   :  { %v1314_v59 = vpop.permute.xlu0 %1313 }
 0x974   :  { %v1316_v4 = vsel %vm1063_vm5, %v1310_v31, %v1314_v59 }
 0x975   :  { %2176 = vmatmul.msk.f32.vlgmr.msrb.gmra.mxu1 %vm769_vm4, %v1316_v4  ;;  %2177 = vmatmul.msk.f32.vlgmr.msrb.gmra.mxu2 %vm769_vm4, %v1316_v4 }
 0x976   :  { %2178 = vmatmul.msk.f32.vlgmr.msrb.gmra.mxu3 %vm769_vm4, %v1316_v4 }
 0x9f8   :  { %v1366_v11 = vpop.f32.mrf.mxu2 }
 0x9f9   :  { %v1389_v39 = vadd.f32 %v1366_v11, %v3142_v45  ;;  %v1386_v0 = vpop.f32.mrf.mxu3 }
 0x9fa   :  { %v1390_v6 = vadd.f32 %v1386_v0, %v3159_v44 }
 0x9fb   :  { %2307 = vtanh.f32 %v1389_v39  ;;  %v1391_v45 = vmul.f32 0.5, %v1389_v39 }
 0x9fc   :  { %2309 = vtanh.f32 %v1390_v6  ;;  %v1413_v15 = vmul.f32 0.5, %v1390_v6 }
 0x9fe   :  { %2311 = vtanh.f32 %v1413_v15 }
 0x9ff   :  { %2313 = vtanh.f32 %v1391_v45 }
 0xa01   :  { %v2308_v7 = vpop.eup %2307 }
 0xa02   :  { %v2310_v21 = vpop.eup %2309  ;;  %1398 = vrot.lane.b32.xlu1 %v2308_v7, %s2406_s6 }
 0xa03   :  { %1420 = vrot.lane.b32.xlu2 %v2310_v21, %s2406_s6 }
 0xa04   :  { %v2312_v50 = vpop.eup %2311 }
 0xa05   :  { %v1415_v53 = vadd.f32 1.0, %v2312_v50  ;;  %v2314_v44 = vpop.eup %2313 }
 0xa06   :  { %v1393_v22 = vadd.f32 1.0, %v2314_v44  ;;  %v1578_v44 = vld [vmem:[%s3564_s8 + $0x138] sm:$0xff] }
 0xa07   :  { %v1416_v40 = vmul.f32 0.5, %v1415_v53  ;;  %1590 = vmatpush.msra.mxu3 %v1578_v44 }
 0xa08   :  { %v1394_v25 = vmul.f32 0.5, %v1393_v22  ;;  %v1577_v22 = vld [vmem:[%s3564_s8 + $0x130] sm:$0xff] }
 0xa09   :  { %v1418_v29 = vmul.f32 %v1416_v40, %v1301_v54  ;;  %1591 = vmatpush.msra.mxu3 %v1577_v22 }
 0xa0a   :  { %v1396_v14 = vmul.f32 %v1394_v25, %v3293_v58  ;;  %v1451_v58 = vld [vmem:[%s3564_s8 + $0xf8] sm:$0xff] }
 0xa0b   :  { %1463 = vmatpush.msra.mxu1 %v1451_v58 }
 0xa0d   :  { %1464 = vmatpush.msra.mxu1 %v1450_v63  ;;  %v3451_v63 = vpop.f32.mrf.mxu1 }
 0xa0f   :  { %1465 = vmatpush.msra.mxu1 %v1449_v27 }
 0xa11   :  { %1466 = vmatpush.msra.mxu1 %v1448_v47 }
 0xa13   :  { %1467 = vmatpush.msra.mxu1 %v1447_v34 }
 0xa15   :  { %1468 = vmatpush.msra.mxu1 %v1446_v28  ;;  %v3453_v27 = vpop.f32.mrf.mxu1 }
 0xa17   :  { %1469 = vmatpush.msra.mxu1 %v1445_v51 }
 0xa19   :  { %1470 = vmatpush.msra.mxu1 %v1444_v1 }
 0xa1b   :  { %1611 = vmatpush.msrb.mxu1 %v3370_v37 }
 0xa1d   :  { %1612 = vmatpush.msrb.mxu1 %v3373_v10 }
 0xa1f   :  { %1613 = vmatpush.msrb.mxu1 %v3376_v56 }
 0xa21   :  { %1614 = vmatpush.msrb.mxu1 %v3379_v12 }
 0xa23   :  { %1615 = vmatpush.msrb.mxu1 %v3382_v19 }
 0xa25   :  { %1616 = vmatpush.msrb.mxu1 %v2976_v38 }
 0xa27   :  { %1617 = vmatpush.msrb.mxu1 %v2983_v5 }
 0xa29   :  { %1618 = vmatpush.msrb.mxu1 %v2992_v49 }
 0xa5d   :  { %v1421_v61 = vpop.permute.xlu2 %1420 }
 0xa5e   :  { %v1423_v16 = vmul.f32 %v1421_v61, %v1416_v40 }
 0xa60   :  { %1425 = vrot.lane.b32.xlu1 %v1423_v16, %s2407_s11 }
 0xa74   :  { %v1399_v17 = vpop.permute.xlu1 %1398 }
 0xa75   :  { %v1401_v24 = vmul.f32 %v1399_v17, %v1394_v25  ;;  %v1575_v17 = vld [vmem:[%s3564_s8 + $0x120] sm:$0xff] }
 0xa77   :  { %1403 = vrot.lane.b32.xlu0 %v1401_v24, %s2407_s11 }
 0xad2   :  { %v1426_v57 = vpop.permute.xlu1 %1425 }
 0xad3   :  { %v3335_v9 = vadd.f32 %v1426_v57, %v1418_v29 }
 0xad5   :  { %2315 = vtanh.f32 %v3335_v9 }
 0xadb   :  { %v2316_v32 = vpop.eup %2315 }
 0xadc   :  { %1431 = vrot.lane.b32.xlu0 %v2316_v32, %s2406_s6  ;;  %v1574_v32 = vld [vmem:[%s3564_s8 + $0x118] sm:$0xff] }
 0xae9   :  { %v1404_v60 = vpop.permute.xlu0 %1403 }
 0xaea   :  { %v3340_v26 = vadd.f32 %v1404_v60, %v1396_v14  ;;  %v1573_v14 = vld [vmem:[%s3564_s8 + $0x110] sm:$0xff]  ;;  %v1572_v60 = vld [vmem:[%s3564_s8 + $0x108] sm:$0xff] }
 0xaec   :  { %2317 = vtanh.f32 %v3340_v26 }
 0xaf2   :  { %v2318_v30 = vpop.eup %2317 }
 0xaf3   :  { %1409 = vrot.lane.b32.xlu2 %v2318_v30, %s2406_s6  ;;  %v2360_v30 = vld [vmem:[#allocation3 + $0x20] sm:$0xff] }
 0xb4d   :  { %v1410_v18 = vpop.permute.xlu2 %1409 }
 0xb4e   :  { %v1432_v23 = vpop.permute.xlu0 %1431  ;;  %v1412_v54 = vmul.f32 %v1410_v18, %v1394_v25  ;;  %v1576_v25 = vld [vmem:[%s3564_s8 + $0x128] sm:$0xff]  ;;  %v2361_v18 = vld [vmem:[#allocation3 + $0x10] sm:$0xff] }
 0xb4f   :  { %v1434_v55 = vmul.f32 %v1432_v23, %v1416_v40  ;;  %1592 = vmatpush.msra.mxu3 %v1576_v25  ;;  %v2362_v23 = vld [vmem:[#allocation3] sm:$0xff] }
 0xb50   :  { %1436 = vrot.lane.b32.xlu1 %v1412_v54, %s2407_s11 }
 0xb51   :  { %1440 = vrot.lane.b32.xlu2 %v1434_v55, %s2406_s6  ;;  %1593 = vmatpush.msra.mxu3 %v1575_v17 }
 0xb53   :  { %1594 = vmatpush.msra.mxu3 %v1574_v32 }
 0xb55   :  { %1595 = vmatpush.msra.mxu3 %v1573_v14 }
 0xb57   :  { %1596 = vmatpush.msra.mxu3 %v1572_v60 }
 0xbab   :  { %v1441_v31 = vpop.permute.xlu2 %1440 }
 0xbc2   :  { %v1437_v59 = vpop.permute.xlu1 %1436 }
 0xbc3   :  { %v1443_v4 = vsel %vm1063_vm5, %v1437_v59, %v1441_v31 }
 0xbc4   :  { %2179 = vmatmul.msk.f32.vlgmr.msra.gmra.mxu1 %vm769_vm4, %v1443_v4  ;;  %2180 = vmatmul.msk.f32.vlgmr.msra.gmra.mxu0 %vm769_vm4, %v1443_v4 }
 0xbc5   :  { %2181 = vmatmul.msk.f32.vlgmr.msra.gmra.mxu2 %vm769_vm4, %v1443_v4  ;;  %1758 = vmatpush.msra.mxu1 %v3030_v8 }
 0xbc7   :  { %1759 = vmatpush.msra.mxu1 %v3041_v36 }
 0xbc9   :  { %1760 = vmatpush.msra.mxu1 %v3044_v41 }
 0xbcb   :  { %1761 = vmatpush.msra.mxu1 %v3057_v33 }
 0xbcd   :  { %1762 = vmatpush.msra.mxu1 %v3061_v42 }
 0xbcf   :  { %1763 = vmatpush.msra.mxu1 %v3065_v43 }
 0xbd1   :  { %1764 = vmatpush.msra.mxu1 %v3069_v46 }
 0xbd3   :  { %1765 = vmatpush.msra.mxu1 %v3087_v62 }
 0xc41   :  { %v1493_v38 = vpop.f32.mrf.mxu0  ;;  %v3455_v47 = vpop.f32.mrf.mxu1 }
 0xc42   :  { %v1516_v5 = vadd.f32 %v1493_v38, %v3144_v52 }
 0xc44   :  { %2319 = vtanh.f32 %v1516_v5  ;;  %v1518_v33 = vmul.f32 0.5, %v1516_v5 }
 0xc48   :  { %v1513_v49 = vpop.f32.mrf.mxu2 }
 0xc49   :  { %v1517_v8 = vadd.f32 %v1513_v49, %v3157_v20 }
 0xc4a   :  { %v2320_v36 = vpop.eup %2319 }
 0xc4b   :  { %2321 = vtanh.f32 %v1517_v8  ;;  %1525 = vrot.lane.b32.xlu0 %v2320_v36, %s2406_s6  ;;  %v1540_v42 = vmul.f32 0.5, %v1517_v8 }
 0xc4c   :  { %2323 = vtanh.f32 %v1518_v33 }
 0xc4d   :  { %2325 = vtanh.f32 %v1540_v42 }
 0xc51   :  { %v2322_v41 = vpop.eup %2321 }
 0xc52   :  { %1547 = vrot.lane.b32.xlu1 %v2322_v41, %s2406_s6  ;;  %v2324_v43 = vpop.eup %2323 }
 0xc53   :  { %v1520_v46 = vadd.f32 1.0, %v2324_v43  ;;  %v2326_v62 = vpop.eup %2325 }
 0xc54   :  { %v1542_v0 = vadd.f32 1.0, %v2326_v62 }
 0xc55   :  { %v1521_v11 = vmul.f32 0.5, %v1520_v46 }
 0xc56   :  { %v1543_v20 = vmul.f32 0.5, %v1542_v0 }
 0xc57   :  { %v1523_v21 = vmul.f32 %v1521_v11, %v3340_v26  ;;  %v1571_v26 = vld [vmem:[%s3564_s8 + $0x100] sm:$0xff] }
 0xc58   :  { %v1545_v40 = vmul.f32 %v1543_v20, %v3335_v9  ;;  %1597 = vmatpush.msra.mxu3 %v1571_v26 }
 0xc5a   :  { %1738 = vmatpush.msrb.mxu3 %v3370_v37 }
 0xc5c   :  { %1739 = vmatpush.msrb.mxu3 %v3373_v10 }
 0xc5e   :  { %1740 = vmatpush.msrb.mxu3 %v3376_v56 }
 0xc60   :  { %1741 = vmatpush.msrb.mxu3 %v3379_v12 }
 0xc62   :  { %1742 = vmatpush.msrb.mxu3 %v3382_v19 }
 0xc64   :  { %1743 = vmatpush.msrb.mxu3 %v2360_v30 }
 0xc66   :  { %1744 = vmatpush.msrb.mxu3 %v2361_v18 }
 0xc68   :  { %1745 = vmatpush.msrb.mxu3 %v2362_v23 }
 0xcbd   :  { %v1526_v52 = vpop.permute.xlu0 %1525 }
 0xcbe   :  { %v1528_v39 = vmul.f32 %v1526_v52, %v1521_v11 }
 0xcc0   :  { %1530 = vrot.lane.b32.xlu2 %v1528_v39, %s2407_s11 }
 0xcc4   :  { %v1548_v6 = vpop.permute.xlu1 %1547 }
 0xcc5   :  { %v1550_v7 = vmul.f32 %v1548_v6, %v1543_v20  ;;  %v1705_v6 = vld [vmem:[%s3564_s8 + $0x178] sm:$0xff] }
 0xcc6   :  { %1717 = vmatpush.msrb.mxu2 %v1705_v6 }
 0xcc7   :  { %1552 = vrot.lane.b32.xlu0 %v1550_v7, %s2407_s11  ;;  %v1704_v7 = vld [vmem:[%s3564_s8 + $0x170] sm:$0xff] }
 0xcc8   :  { %1718 = vmatpush.msrb.mxu2 %v1704_v7  ;;  %v2269_v7 = vld [vmem:[%s3565_s9] ss:$0 sm:$0xff] }
 0xd1a   :  { %v1531_v15 = vpop.permute.xlu2 %1530 }
 0xd1b   :  { %v3407_v50 = vadd.f32 %v1531_v15, %v1523_v21  ;;  %v1703_v21 = vld [vmem:[%s3564_s8 + $0x168] sm:$0xff]  ;;  %v1702_v15 = vld [vmem:[%s3564_s8 + $0x160] sm:$0xff] }
 0xd1c   :  { %1719 = vmatpush.msrb.mxu2 %v1703_v21 }
 0xd1d   :  { %2327 = vtanh.f32 %v3407_v50 }
 0xd1e   :  { %1720 = vmatpush.msrb.mxu2 %v1702_v15 }
 0xd23   :  { %v2328_v53 = vpop.eup %2327 }
 0xd24   :  { %1536 = vrot.lane.b32.xlu1 %v2328_v53, %s2406_s6  ;;  %v1700_v53 = vld [vmem:[%s3564_s8 + $0x150] sm:$0xff] }
 0xd39   :  { %v1553_v61 = vpop.permute.xlu0 %1552 }
 0xd3a   :  { %v3412_v16 = vadd.f32 %v1553_v61, %v1545_v40  ;;  %v1699_v40 = vld [vmem:[%s3564_s8 + $0x148] sm:$0xff]  ;;  %v1698_v61 = vld [vmem:[%s3564_s8 + $0x140] sm:$0xff] }
 0xd3c   :  { %2329 = vtanh.f32 %v3412_v16 }
 0xd42   :  { %v2330_v45 = vpop.eup %2329 }
 0xd43   :  { %1558 = vrot.lane.b32.xlu2 %v2330_v45, %s2406_s6 }
 0xd96   :  { %v1537_v24 = vpop.permute.xlu1 %1536 }
 0xd97   :  { %v1539_v29 = vmul.f32 %v1537_v24, %v1521_v11 }
 0xd99   :  { %1563 = vrot.lane.b32.xlu0 %v1539_v29, %s2407_s11 }
 0xd9d   :  { %v1559_v57 = vpop.permute.xlu2 %1558 }
 0xd9e   :  { %v1561_v9 = vmul.f32 %v1559_v57, %v1543_v20 }
 0xda0   :  { %1567 = vrot.lane.b32.xlu1 %v1561_v9, %s2406_s6 }
 0xe0b   :  { %v1564_v54 = vpop.permute.xlu0 %1563 }
 0xe12   :  { %v1568_v55 = vpop.permute.xlu1 %1567 }
 0xe13   :  { %v1570_v58 = vsel %vm1063_vm5, %v1564_v54, %v1568_v55 }
 0xe14   :  { %2182 = vmatmul.msk.f32.vlgmr.msra.gmra.mxu3 %vm769_vm4, %v1570_v58  ;;  %2183 = vmatmul.msk.f32.vlgmr.msrb.gmra.mxu1 %vm769_vm4, %v1570_v58 }
 0xe15   :  { %2184 = vmatmul.msk.f32.vlgmr.msrb.gmra.mxu0 %vm769_vm4, %v1570_v58 }
 0xe91   :  { %v1620_v34 = vpop.f32.mrf.mxu1 }
 0xe92   :  { %v1643_v28 = vadd.f32 %v1620_v34, %v3146_v35  ;;  %v1640_v51 = vpop.f32.mrf.mxu0 }
 0xe93   :  { %v1644_v1 = vadd.f32 %v1640_v51, %v3154_v13 }
 0xe94   :  { %2331 = vtanh.f32 %v1643_v28  ;;  %v1645_v56 = vmul.f32 0.5, %v1643_v28 }
 0xe95   :  { %2333 = vtanh.f32 %v1644_v1  ;;  %v1667_v35 = vmul.f32 0.5, %v1644_v1 }
 0xe96   :  { %2335 = vtanh.f32 %v1645_v56 }
 0xe97   :  { %2337 = vtanh.f32 %v1667_v35  ;;  %v3500_v22 = vpop.f32.mrf.mxu3  ;;  %v1832_v35 = vld [vmem:[%s3564_s8 + $0x1b8] sm:$0xff] }
 0xe98   :  { %1844 = vmatpush.msra.mxu0 %v1832_v35 }
 0xe9a   :  { %v2332_v37 = vpop.eup %2331 }
 0xe9b   :  { %v2334_v10 = vpop.eup %2333  ;;  %1652 = vrot.lane.b32.xlu2 %v2332_v37, %s2406_s6 }
 0xe9c   :  { %1674 = vrot.lane.b32.xlu0 %v2334_v10, %s2406_s6  ;;  %v2336_v12 = vpop.eup %2335 }
 0xe9d   :  { %v1647_v19 = vadd.f32 1.0, %v2336_v12  ;;  %v2338_v13 = vpop.eup %2337 }
 0xe9e   :  { %v1669_v38 = vadd.f32 1.0, %v2338_v13  ;;  %v1831_v13 = vld [vmem:[%s3564_s8 + $0x1b0] sm:$0xff] }
 0xe9f   :  { %v1648_v31 = vmul.f32 0.5, %v1647_v19  ;;  %1845 = vmatpush.msra.mxu0 %v1831_v13 }
 0xea0   :  { %v1670_v5 = vmul.f32 0.5, %v1669_v38  ;;  %v1830_v38 = vld [vmem:[%s3564_s8 + $0x1a8] sm:$0xff] }
 0xea1   :  { %v1650_v36 = vmul.f32 %v1648_v31, %v3407_v50  ;;  %v1701_v50 = vld [vmem:[%s3564_s8 + $0x158] sm:$0xff]  ;;  %1846 = vmatpush.msra.mxu0 %v1830_v38 }
 0xea2   :  { %v1672_v41 = vmul.f32 %v1670_v5, %v3412_v16  ;;  %1721 = vmatpush.msrb.mxu2 %v1701_v50 }
 0xea4   :  { %1722 = vmatpush.msrb.mxu2 %v1700_v53 }
 0xea6   :  { %1723 = vmatpush.msrb.mxu2 %v1699_v40  ;;  %v2270_v40 = vld [vmem:[#allocation2] ss:$0 sm:$0xff] }
 0xea8   :  { %1724 = vmatpush.msrb.mxu2 %v1698_v61 }
 0xef5   :  { %v1653_v59 = vpop.permute.xlu2 %1652 }
 0xef6   :  { %v1655_v4 = vmul.f32 %v1653_v59, %v1648_v31 }
 0xef8   :  { %1657 = vrot.lane.b32.xlu1 %v1655_v4, %s2407_s11 }
 0xf0e   :  { %v1675_v49 = vpop.permute.xlu0 %1674 }
 0xf0f   :  { %v1677_v8 = vmul.f32 %v1675_v49, %v1670_v5  ;;  %v1828_v49 = vld [vmem:[%s3564_s8 + $0x198] sm:$0xff] }
 0xf11   :  { %1679 = vrot.lane.b32.xlu2 %v1677_v8, %s2407_s11  ;;  %v1827_v8 = vld [vmem:[%s3564_s8 + $0x190] sm:$0xff] }
 0xf6a   :  { %v1658_v33 = vpop.permute.xlu1 %1657 }
 0xf6b   :  { %v1680_v42 = vpop.permute.xlu2 %1679  ;;  %v3465_v43 = vadd.f32 %v1658_v33, %v1650_v36  ;;  %v1826_v36 = vld [vmem:[%s3564_s8 + $0x188] sm:$0xff] }
 0xf6c   :  { %v1682_v46 = vadd.f32 %v1680_v42, %v1672_v41  ;;  %v1825_v41 = vld [vmem:[%s3564_s8 + $0x180] sm:$0xff]  ;;  %v1864_v33 = vld [vmem:[%s3566_s10 + $0x8] sm:$0xff] }
 0xf6d   :  { %2339 = vtanh.f32 %v3465_v43  ;;  %1887 = vmatpush.msra.mxu2 %v1864_v33 }
 0xf6e   :  { %2341 = vtanh.f32 %v1682_v46 }
 0xf73   :  { %v2340_v62 = vpop.eup %2339 }
 0xf74   :  { %v2342_v11 = vpop.eup %2341  ;;  %1663 = vrot.lane.b32.xlu0 %v2340_v62, %s2406_s6  ;;  %v1863_v62 = vld [vmem:[%s3566_s10] sm:$0xff] }
 0xf75   :  { %1685 = vrot.lane.b32.xlu1 %v2342_v11, %s2406_s6  ;;  %1888 = vmatpush.msra.mxu2 %v1863_v62  ;;  %v1220_v11 = vadd.f32 %v3451_v63, %v3284_v3 }
 0xfe6   :  { %v1664_v52 = vpop.permute.xlu0 %1663 }
 0xfe7   :  { %v1686_v39 = vpop.permute.xlu1 %1685  ;;  %v1666_v0 = vmul.f32 %v1664_v52, %v1648_v31  ;;  %v1348_v52 = vadd.f32 %v3453_v27, %v1220_v11 }
 0xfe8   :  { %v1688_v20 = vmul.f32 %v1686_v39, %v1670_v5  ;;  %v1829_v5 = vld [vmem:[%s3564_s8 + $0x1a0] sm:$0xff] }
 0xfe9   :  { %1690 = vrot.lane.b32.xlu2 %v1666_v0, %s2407_s11  ;;  %1847 = vmatpush.msra.mxu0 %v1829_v5  ;;  %v1475_v39 = vadd.f32 %v3455_v47, %v1348_v52 }
 0xfea   :  { %1694 = vrot.lane.b32.xlu0 %v1688_v20, %s2406_s6 }
 0xfeb   :  { %1848 = vmatpush.msra.mxu0 %v1828_v49  ;;  %v1602_v20 = vadd.f32 %v3500_v22, %v1475_v39 }
 0xfed   :  { %1849 = vmatpush.msra.mxu0 %v1827_v8 }
 0xfef   :  { %1850 = vmatpush.msra.mxu0 %v1826_v36 }
 0xff1   :  { %1851 = vmatpush.msra.mxu0 %v1825_v41 }
0x1043   :  { %v1691_v16 = vpop.permute.xlu2 %1690 }
0x105c   :  { %v1695_v45 = vpop.permute.xlu0 %1694 }
0x105d   :  { %v1697_v44 = vsel %vm1063_vm5, %v1691_v16, %v1695_v45 }
0x105e   :  { %2185 = vmatmul.msk.f32.vlgmr.msrb.gmra.mxu2 %vm769_vm4, %v1697_v44  ;;  %2186 = vmatmul.msk.f32.vlgmr.msrb.gmra.mxu3 %vm769_vm4, %v1697_v44 }
0x105f   :  { %2187 = vmatmul.msk.f32.vlgmr.msra.gmra.mxu1 %vm769_vm4, %v1697_v44 }
0x10dc   :  { %v1767_v25 = vpop.f32.mrf.mxu1 }
0x10dd   :  { %v1771_v17 = vadd.f32 %v1767_v25, %v3151_v2 }
0x10df   :  { %2343 = vtanh.f32 %v1771_v17  ;;  %v1794_v32 = vmul.f32 0.5, %v1771_v17 }
0x10e1   :  { %v1747_v24 = vpop.f32.mrf.mxu3  ;;  %v1726_v0 = vpop.f32.mrf.mxu2 }
0x10e2   :  { %v1770_v29 = vadd.f32 %v1747_v24, %v3148_v48  ;;  %v1729_v6 = vadd.f32 %v1726_v0, %v1602_v20 }
0x10e4   :  { %2345 = vtanh.f32 %v1770_v29  ;;  %v1772_v2 = vmul.f32 0.5, %v1770_v29 }
0x10e5   :  { %v2344_v57 = vpop.eup %2343  ;;  %2347 = vtanh.f32 %v1794_v32 }
0x10e6   :  { %1801 = vrot.lane.b32.xlu2 %v2344_v57, %s2406_s6  ;;  %2349 = vtanh.f32 %v1772_v2 }
0x10ea   :  { %v2346_v9 = vpop.eup %2345 }
0x10eb   :  { %1779 = vrot.lane.b32.xlu1 %v2346_v9, %s2406_s6  ;;  %v2348_v14 = vpop.eup %2347 }
0x10ec   :  { %v1796_v60 = vadd.f32 1.0, %v2348_v14  ;;  %v2350_v23 = vpop.eup %2349 }
0x10ed   :  { %v1774_v48 = vadd.f32 1.0, %v2350_v23 }
0x10ee   :  { %v1797_v26 = vmul.f32 0.5, %v1796_v60 }
0x10ef   :  { %v1775_v54 = vmul.f32 0.5, %v1774_v48 }
0x10f0   :  { %v1799_v34 = vmul.f32 %v1797_v26, %v1682_v46 }
0x10f1   :  { %v1777_v37 = vmul.f32 %v1775_v54, %v3465_v43 }
0x1140   :  { %v1802_v30 = vpop.permute.xlu2 %1801 }
0x1141   :  { %v1804_v18 = vmul.f32 %v1802_v30, %v1797_v26 }
0x1143   :  { %1806 = vrot.lane.b32.xlu1 %v1804_v18, %s2407_s11 }
0x115d   :  { %v1780_v55 = vpop.permute.xlu1 %1779 }
0x115e   :  { %v1782_v58 = vmul.f32 %v1780_v55, %v1775_v54 }
0x1160   :  { %1784 = vrot.lane.b32.xlu0 %v1782_v58, %s2407_s11 }
0x11b5   :  { %v1807_v28 = vpop.permute.xlu1 %1806 }
0x11b6   :  { %v1809_v51 = vadd.f32 %v1807_v28, %v1799_v34 }
0x11b8   :  { %2351 = vtanh.f32 %v1809_v51 }
0x11be   :  { %v2352_v1 = vpop.eup %2351 }
0x11bf   :  { %1812 = vrot.lane.b32.xlu0 %v2352_v1, %s2406_s6 }
0x11d2   :  { %v1785_v10 = vpop.permute.xlu0 %1784 }
0x11d3   :  { %v1787_v56 = vadd.f32 %v1785_v10, %v1777_v37 }
0x11d5   :  { %2353 = vtanh.f32 %v1787_v56 }
0x11db   :  { %v2354_v12 = vpop.eup %2353 }
0x11dc   :  { %1790 = vrot.lane.b32.xlu2 %v2354_v12, %s2406_s6 }
0x1231   :  { %v1813_v19 = vpop.permute.xlu0 %1812 }
0x1232   :  { %v1815_v31 = vmul.f32 %v1813_v19, %v1797_v26 }
0x1234   :  { %1821 = vrot.lane.b32.xlu2 %v1815_v31, %s2406_s6 }
0x1236   :  { %v1791_v59 = vpop.permute.xlu2 %1790 }
0x1237   :  { %v1793_v4 = vmul.f32 %v1791_v59, %v1775_v54 }
0x1239   :  { %1817 = vrot.lane.b32.xlu1 %v1793_v4, %s2407_s11 }
0x128e   :  { %v1822_v42 = vpop.permute.xlu2 %1821 }
0x12ab   :  { %v1818_v43 = vpop.permute.xlu1 %1817 }
0x12ac   :  { %v1824_v46 = vsel %vm1063_vm5, %v1818_v43, %v1822_v42 }
0x12ad   :  { %2188 = vmatmul.msk.f32.vlgmr.msra.gmra.mxu0 %vm769_vm4, %v1824_v46 }
0x132a   :  { %v1853_v21 = vpop.f32.mrf.mxu0 }
0x132b   :  { %v1856_v15 = vadd.f32 %v1853_v21, %v1729_v6 }
0x132d   :  { %v1861_v50 = vadd.f32 %v2269_v7, %v1856_v15 }
0x132f   :  { %v1862_v53 = vmax.f32 %v1861_v50, 0.0 }
0x1331   :  { %2189 = vmatmul.msk.f32.vlgmr.msra.gmra.mxu2 %vm1869_vm6, %v1862_v53 }
0x13b4   :  { %v1890_v3 = vpop.f32.mrf.mxu2 }
0x13b5   :  { %v1891_v63 = vadd.f32 %v2270_v40, %v1890_v3 }
0x13b7   :  { %1894 = vst.msk [vmem:[%s3568_s12] sm:$0xff] %vm1893_vm7, %v1891_v63 }
0x13b8   :  { %1899 = vsyncpa [#allocation4], 1 }

</bundles_post_ra>
